<compile_context>
chip_gen: v7x
topology: tpu7x:2x2x1
jax: 0.10.0
libtpu: 0.0.40
codegen_flags: <defaults>
</compile_context>

<pallas_src>
import functools

import jax
import jax.numpy as jnp
import numpy as np
from jax import lax
from jax.experimental import pallas as pl
from jax.experimental.pallas import tpu as pltpu

EPS = 1e-5
LANE = 128                        # channel padding target (lane width)
VMEM_LIMIT = 32 * 1024 * 1024     # explicit scoped-VMEM limit (safe on v5e/v6e/v7x)


# ---------------------------------------------------------------------------
# Small helpers
# ---------------------------------------------------------------------------
def _round_up(x, m):
    return (x + m - 1) // m * m


def _vmem_budget_bytes():
    """Conservative per-call VMEM working-set budget, derived per chip."""
    try:
        cap = pltpu.get_tpu_info().vmem_capacity_bytes
    except Exception:
        cap = 64 << 20  # assume the smallest generation (v7x per-TC VMEM)
    return min(cap // 4, 24 << 20, VMEM_LIMIT - (4 << 20))


def _auto_row_tile(k, cp):
    """Largest row tile whose double-buffered pass-1 working set fits VMEM."""
    budget = _vmem_budget_bytes()
    fixed = k * cp * 2 + 8 * cp * 4 + (64 << 10)     # weights + params + slack
    per_row = 2 * (k * 2 + cp * 4)                   # bf16 patches + f32 y, x2 buffers
    tr = (budget - fixed) // per_row
    tr = int(max(8, min(tr, 4096)))
    return (tr // 8) * 8


def _whole_vmem_specs(n):
    return [pl.BlockSpec(memory_space=pltpu.MemorySpace.VMEM) for _ in range(n)]


def _mish(z):
    # mish(z) = z * tanh(softplus(z)) = z * ((1+e^z)^2 - 1) / ((1+e^z)^2 + 1)
    # One EUP exp + near-free approx reciprocal instead of exp + log1p + tanh.
    t = jnp.exp(jnp.minimum(z, 20.0))   # clamp: for z > 20 the ratio is ~1 anyway
    u = (1.0 + t) * (1.0 + t)
    return z * (u - 1.0) * pl.reciprocal(u + 1.0, approx=True)


# ---------------------------------------------------------------------------
# Pallas kernels
# ---------------------------------------------------------------------------
def _fused_conv_bn_mish_kernel(p_ref, w_ref, b_ref, g_ref, beta_ref, o_ref, *, eps):
    # Small-R path: the whole (R, K) patch block fits one VMEM tile, so conv
    # matmul, batch stats, BN and Mish stay resident in VMEM (no y spill).
    y = jnp.dot(p_ref[...], w_ref[...], preferred_element_type=jnp.float32)
    y = y + b_ref[...]
    inv_r = 1.0 / y.shape[0]
    mean = jnp.sum(y, axis=0, keepdims=True) * inv_r
    var = jnp.maximum(jnp.sum(y * y, axis=0, keepdims=True) * inv_r - mean * mean, 0.0)
    z = g_ref[...] * (y - mean) * lax.rsqrt(var + eps) + beta_ref[...]
    o_ref[...] = _mish(z).astype(o_ref.dtype)


def _conv_stats_kernel(p_ref, w_ref, b_ref, y_ref, mean_ref, var_ref,
                       sum_acc, sq_acc, *, r_true):
    # Pass 1 (row-tiled, sequential/"arbitrary"): matmul + bias, accumulate
    # per-channel sum / sum-of-squares; emit mean/var on the last tile.
    t = pl.program_id(0)

    @pl.when(t == 0)
    def _():
        sum_acc[...] = jnp.zeros_like(sum_acc)
        sq_acc[...] = jnp.zeros_like(sq_acc)

    y = jnp.dot(p_ref[...], w_ref[...], preferred_element_type=jnp.float32)
    y = y + b_ref[...]
    y_ref[...] = y

    # Mask rows beyond the true R (row padding) out of the batch statistics.
    rows = t * y.shape[0] + lax.broadcasted_iota(jnp.int32, (y.shape[0], 1), 0)
    ym = jnp.where(rows < r_true, y, 0.0)
    sum_acc[...] += jnp.sum(ym, axis=0, keepdims=True)
    sq_acc[...] += jnp.sum(ym * ym, axis=0, keepdims=True)

    @pl.when(t == pl.num_programs(0) - 1)
    def _():
        inv_r = 1.0 / r_true
        mean = sum_acc[...] * inv_r
        mean_ref[...] = mean
        var_ref[...] = jnp.maximum(sq_acc[...] * inv_r - mean * mean, 0.0)


def _bn_mish_kernel(y_ref, mean_ref, var_ref, g_ref, beta_ref, o_ref, *, eps):
    # Pass 2 (row-tiled, "parallel"/megacore): normalize + Mish.
    z = (g_ref[...] * (y_ref[...] - mean_ref[...])
         * lax.rsqrt(var_ref[...] + eps) + beta_ref[...])
    o_ref[...] = _mish(z).astype(o_ref.dtype)


def _linear_kernel(x_ref, w_ref, b_ref, o_ref, *, weight_gain):
    # StyleGAN FullyConnectedLayer, activation='linear', lr_multiplier=1:
    #   y = x @ W.T / sqrt(in_features) + b
    # Contract against W's native (out, in) layout (no wrapper transpose) and
    # apply the gain to the (rows, Cp) result instead of the (Cp, Cp) weight.
    y = lax.dot_general(x_ref[...], w_ref[...], (((1,), (1,)), ((), ())),
                        preferred_element_type=jnp.float32)
    o_ref[...] = y * weight_gain + b_ref[...]


# ---------------------------------------------------------------------------
# Plain-JAX glue (patch extraction, padding, parameter layout)
# ---------------------------------------------------------------------------
def _im2col_s2(x_nhwc, k=3, s=2, p=1):
    """Host-side im2col for the stride-2 3x3 conv.

    TODO(synk): eliminate this HBM blow-up by doing the 9-tap accumulation
    in-kernel over a haloed NHWC tile (or allow_input_fusion of this chain).
    """
    N, H, W, C = x_nhwc.shape
    Ho = (H + 2 * p - k) // s + 1
    Wo = (W + 2 * p - k) // s + 1
    xp = jnp.pad(x_nhwc, ((0, 0), (p, p), (p, p), (0, 0)))
    cols = []
    for dy in range(k):
        for dx in range(k):
            cols.append(xp[:, dy:dy + s * Ho:s, dx:dx + s * Wo:s, :])
    patches = jnp.stack(cols, axis=3)                       # (N, Ho, Wo, k*k, C)
    return patches.reshape(N * Ho * Wo, k * k * C), Ho, Wo


def conv_block(x_nhwc, blk, cp, row_tile=None):
    """One ConvBlock: strided 3x3 conv + training-mode BN + Mish."""
    n = x_nhwc.shape[0]
    patches, ho, wo = _im2col_s2(x_nhwc)                    # (R, K) bf16
    r, k = patches.shape
    wmat, bias, gamma, beta = blk["w"], blk["b"], blk["gamma"], blk["beta"]
    tr = row_tile if row_tile is not None else _auto_row_tile(k, cp)

    if r <= tr:
        # Whole block fits one VMEM tile: fully fused, y never leaves VMEM.
        act = pl.pallas_call(
            functools.partial(_fused_conv_bn_mish_kernel, eps=EPS),
            out_shape=jax.ShapeDtypeStruct((r, cp), jnp.bfloat16),
            in_specs=_whole_vmem_specs(5),
            out_specs=pl.BlockSpec(memory_space=pltpu.MemorySpace.VMEM),
            compiler_params=pltpu.CompilerParams(vmem_limit_bytes=VMEM_LIMIT),
        )(patches, wmat, bias, gamma, beta)
        return act.reshape(n, ho, wo, cp)

    # --- tiled two-pass path -------------------------------------------------
    n_tiles = -(-r // tr)
    r_pad = n_tiles * tr
    if r_pad != r:
        patches = jnp.pad(patches, ((0, r_pad - r), (0, 0)))

    # Pass 1: pipelined conv matmul + bias, cross-tile sum/sumsq accumulation.
    y, mean, var = pl.pallas_call(
        functools.partial(_conv_stats_kernel, r_true=r),
        grid=(n_tiles,),
        in_specs=[
            pl.BlockSpec((tr, k), lambda i: (i, 0)),
            pl.BlockSpec((k, cp), lambda i: (0, 0)),
            pl.BlockSpec((1, cp), lambda i: (0, 0)),
        ],
        out_specs=(
            pl.BlockSpec((tr, cp), lambda i: (i, 0)),
            pl.BlockSpec((1, cp), lambda i: (0, 0)),
            pl.BlockSpec((1, cp), lambda i: (0, 0)),
        ),
        out_shape=(
            jax.ShapeDtypeStruct((r_pad, cp), jnp.float32),
            jax.ShapeDtypeStruct((1, cp), jnp.float32),
            jax.ShapeDtypeStruct((1, cp), jnp.float32),
        ),
        scratch_shapes=[pltpu.VMEM((1, cp), jnp.float32),
                        pltpu.VMEM((1, cp), jnp.float32)],
        compiler_params=pltpu.CompilerParams(
            dimension_semantics=("arbitrary",),
            vmem_limit_bytes=VMEM_LIMIT),
    )(patches, wmat, bias)

    # Pass 2: normalize + Mish; row tiles independent -> megacore parallel.
    act = pl.pallas_call(
        functools.partial(_bn_mish_kernel, eps=EPS),
        grid=(n_tiles,),
        in_specs=[
            pl.BlockSpec((tr, cp), lambda i: (i, 0)),
            pl.BlockSpec((1, cp), lambda i: (0, 0)),
            pl.BlockSpec((1, cp), lambda i: (0, 0)),
            pl.BlockSpec((1, cp), lambda i: (0, 0)),
            pl.BlockSpec((1, cp), lambda i: (0, 0)),
        ],
        out_specs=pl.BlockSpec((tr, cp), lambda i: (i, 0)),
        out_shape=jax.ShapeDtypeStruct((r_pad, cp), jnp.bfloat16),
        compiler_params=pltpu.CompilerParams(
            dimension_semantics=("parallel",),
            vmem_limit_bytes=VMEM_LIMIT),
    )(y, mean, var, gamma, beta)

    return act[:r].reshape(n, ho, wo, cp)


def full_down_and_flatten(x_nchw, prep, *, c2, row_tile=None):
    """Forward pass of FullDownAndFlatten."""
    cp = prep["linear"]["w"].shape[0]
    x = jnp.transpose(x_nchw, (0, 2, 3, 1)).astype(jnp.bfloat16)   # NCHW -> NHWC
    # TODO(synk): fuse the <=4x4 tail blocks + the final FC into a single
    # pallas_call that keeps activations in VMEM across stages (currently each
    # tiny block is still one fused call, which already avoids the y spill).
    for blk in prep["convs"]:
        x = conv_block(x, blk, cp, row_tile=row_tile)
    # After log2(imsize) stride-2 convs the spatial extent is 1x1, so torch's
    # x.view(-1, c2) is just (N, c2).
    n, h, w, _ = x.shape
    xf = x.reshape(n * h * w, cp)
    weight_gain = float(1.0 / np.sqrt(c2))   # lr_multiplier = 1, in_features = c2
    out = pl.pallas_call(
        functools.partial(_linear_kernel, weight_gain=weight_gain),
        out_shape=jax.ShapeDtypeStruct((xf.shape[0], cp), jnp.float32),
        in_specs=_whole_vmem_specs(3),
        out_specs=pl.BlockSpec(memory_space=pltpu.MemorySpace.VMEM),
        compiler_params=pltpu.CompilerParams(vmem_limit_bytes=VMEM_LIMIT),
    )(xf, prep["linear"]["w"], prep["linear"]["b"])
    return out[:, :c2]


# ---------------------------------------------------------------------------
# Deterministic parameter init (torch-style layouts) + kernel-ready repack
# ---------------------------------------------------------------------------
def init_params(key, imsize, c1, c2):
    nblocks = int(np.log2(imsize))
    params = {"convs": []}
    for i in range(nblocks):
        cin = c1 if i == 0 else c2
        key, k1, k2, k3 = jax.random.split(key, 4)
        w = jax.random.normal(k1, (c2, cin, 3, 3), jnp.float32) / np.sqrt(cin * 9)
        b = 0.01 * jax.random.normal(k2, (c2,), jnp.float32)
        gamma = 1.0 + 0.1 * jax.random.normal(k3, (c2,), jnp.float32)
        beta = jnp.zeros((c2,), jnp.float32)
        params["convs"].append({"w": w, "b": b, "gamma": gamma, "beta": beta})
    key, kw = jax.random.split(key)
    # FullyConnectedLayer init: weight = randn(out, in) / lr_multiplier, bias = 0
    wl = jax.random.normal(kw, (c2, c2), jnp.float32)
    bl = jnp.zeros((c2,), jnp.float32)
    params["linear"] = {"w": wl, "b": bl}
    return params


def prepare_params(params, c2):
    """Repack torch-layout params into padded, lane-dense kernel layout (once)."""
    cp = _round_up(c2, LANE)
    prep = {"convs": []}
    for i, p in enumerate(params["convs"]):
        cout, cin = p["w"].shape[0], p["w"].shape[1]
        cin_pad = cin if i == 0 else cp          # activations are cp-wide after block 0
        w_t = jnp.transpose(p["w"], (2, 3, 1, 0))                 # (kh, kw, cin, cout)
        w_full = jnp.zeros((3, 3, cin_pad, cp), jnp.float32)
        w_full = w_full.at[:, :, :cin, :cout].set(w_t)
        wmat = w_full.reshape(9 * cin_pad, cp).astype(jnp.bfloat16)

        def pad1(v):
            return jnp.zeros((1, cp), jnp.float32).at[0, :cout].set(v)

        prep["convs"].append({"w": wmat, "b": pad1(p["b"]),
                              "gamma": pad1(p["gamma"]), "beta": pad1(p["beta"])})
    wl, bl = params["linear"]["w"], params["linear"]["b"]
    w_pad = jnp.zeros((cp, cp), jnp.float32).at[:c2, :c2].set(wl).astype(jnp.bfloat16)
    b_pad = jnp.zeros((1, cp), jnp.float32).at[0, :c2].set(bl)
    prep["linear"] = {"w": w_pad, "b": b_pad}
    return prep


if __name__ == "__main__":
    imsize, c1, c2, batch = 16, 4, 32, 2   # 4 down-sampling blocks: 16->8->4->2->1
    key = jax.random.PRNGKey(0)
    key, kx = jax.random.split(key)
    x = jax.random.normal(kx, (batch, c1, imsize, imsize), jnp.float32)
    params = init_params(key, imsize, c1, c2)
    prep = prepare_params(params, c2)

    # Default path: VMEM-budgeted row tiles (toy blocks fit -> fused kernels).
    fwd = jax.jit(functools.partial(full_down_and_flatten, c2=c2))
    out = jax.block_until_ready(fwd(x, prep))

    # Force a small row tile so the first block exercises the tiled two-pass
    # (conv+stats / BN+Mish) pipeline, including row padding + stat masking.
    fwd_tiled = jax.jit(functools.partial(full_down_and_flatten, c2=c2, row_tile=48))
    out_tiled = jax.block_until_ready(fwd_tiled(x, prep))

    assert out.shape == (batch, c2), out.shape
    assert bool(jnp.all(jnp.isfinite(out)))
    assert bool(jnp.all(jnp.isfinite(out_tiled)))
    assert bool(jnp.allclose(out, out_tiled, rtol=2e-2, atol=2e-2)), (
        float(jnp.max(jnp.abs(out - out_tiled))))
    print("KERNEL_OK")
</pallas_src>

<mosaic_0001>
module attributes {stable_mosaic.version = 11 : i64} {
  func.func @_fused_conv_bn_mish_kernel(%arg0: memref<128x36xbf16, #tpu.memory_space<vmem>>, %arg1: memref<36x128xbf16, #tpu.memory_space<vmem>>, %arg2: memref<1x128xf32, #tpu.memory_space<vmem>>, %arg3: memref<1x128xf32, #tpu.memory_space<vmem>>, %arg4: memref<1x128xf32, #tpu.memory_space<vmem>>, %arg5: memref<128x128xbf16, #tpu.memory_space<vmem>>) attributes {dimension_semantics = [], scalar_prefetch = 0 : i64, scratch_operands = 0 : i64, tpu.core_type = #tpu.core_type<tc>} {
    %c0 = arith.constant 0 : index
    %c0_0 = arith.constant 0 : index
    %0 = vector.load %arg0[%c0, %c0_0] : memref<128x36xbf16, #tpu.memory_space<vmem>>, vector<128x36xbf16>
    %c0_1 = arith.constant 0 : index
    %c0_2 = arith.constant 0 : index
    %1 = vector.load %arg1[%c0_1, %c0_2] : memref<36x128xbf16, #tpu.memory_space<vmem>>, vector<36x128xbf16>
    %cst = arith.constant dense<0.000000e+00> : vector<128x128xf32>
    %2 = tpu.matmul %0, %1, %cst {dimension_numbers = #tpu.dot_dimension_numbers<[1], [0], [0], [1], [0, 0, 1, 1], [], []>} : vector<128x36xbf16>, vector<36x128xbf16>, vector<128x128xf32> -> vector<128x128xf32>
    %c0_3 = arith.constant 0 : index
    %c0_4 = arith.constant 0 : index
    %3 = vector.load %arg2[%c0_3, %c0_4] : memref<1x128xf32, #tpu.memory_space<vmem>>, vector<1x128xf32>
    %4 = vector.broadcast %3 : vector<1x128xf32> to vector<128x128xf32>
    %5 = arith.addf %2, %4 : vector<128x128xf32>
    %cst_5 = arith.constant dense<0.000000e+00> : vector<128xf32>
    %6 = vector.multi_reduction <add>, %5, %cst_5 [0] : vector<128x128xf32> to vector<128xf32>
    %7 = vector.shape_cast %6 : vector<128xf32> to vector<1x128xf32>
    %cst_6 = arith.constant 7.812500e-03 : f32
    %8 = vector.broadcast %cst_6 : f32 to vector<1x128xf32>
    %9 = arith.mulf %7, %8 : vector<1x128xf32>
    %10 = arith.mulf %5, %5 : vector<128x128xf32>
    %cst_7 = arith.constant dense<0.000000e+00> : vector<128xf32>
    %11 = vector.multi_reduction <add>, %10, %cst_7 [0] : vector<128x128xf32> to vector<128xf32>
    %12 = vector.shape_cast %11 : vector<128xf32> to vector<1x128xf32>
    %cst_8 = arith.constant 7.812500e-03 : f32
    %13 = vector.broadcast %cst_8 : f32 to vector<1x128xf32>
    %14 = arith.mulf %12, %13 : vector<1x128xf32>
    %15 = arith.mulf %9, %9 : vector<1x128xf32>
    %16 = arith.subf %14, %15 : vector<1x128xf32>
    %cst_9 = arith.constant 0.000000e+00 : f32
    %17 = vector.broadcast %cst_9 : f32 to vector<1x128xf32>
    %18 = arith.maximumf %16, %17 : vector<1x128xf32>
    %c0_10 = arith.constant 0 : index
    %c0_11 = arith.constant 0 : index
    %19 = vector.load %arg3[%c0_10, %c0_11] : memref<1x128xf32, #tpu.memory_space<vmem>>, vector<1x128xf32>
    %20 = vector.broadcast %9 : vector<1x128xf32> to vector<128x128xf32>
    %21 = arith.subf %5, %20 : vector<128x128xf32>
    %22 = vector.broadcast %19 : vector<1x128xf32> to vector<128x128xf32>
    %23 = arith.mulf %22, %21 : vector<128x128xf32>
    %cst_12 = arith.constant 9.99999974E-6 : f32
    %24 = vector.broadcast %cst_12 : f32 to vector<1x128xf32>
    %25 = arith.addf %18, %24 : vector<1x128xf32>
    %26 = math.rsqrt %25 : vector<1x128xf32>
    %27 = vector.broadcast %26 : vector<1x128xf32> to vector<128x128xf32>
    %28 = arith.mulf %23, %27 : vector<128x128xf32>
    %c0_13 = arith.constant 0 : index
    %c0_14 = arith.constant 0 : index
    %29 = vector.load %arg4[%c0_13, %c0_14] : memref<1x128xf32, #tpu.memory_space<vmem>>, vector<1x128xf32>
    %30 = vector.broadcast %29 : vector<1x128xf32> to vector<128x128xf32>
    %31 = arith.addf %28, %30 : vector<128x128xf32>
    %cst_15 = arith.constant 2.000000e+01 : f32
    %32 = vector.broadcast %cst_15 : f32 to vector<128x128xf32>
    %33 = arith.minimumf %31, %32 : vector<128x128xf32>
    %34 = math.exp %33 : vector<128x128xf32>
    %cst_16 = arith.constant 1.000000e+00 : f32
    %35 = vector.broadcast %cst_16 : f32 to vector<128x128xf32>
    %36 = arith.addf %35, %34 : vector<128x128xf32>
    %cst_17 = arith.constant 1.000000e+00 : f32
    %37 = vector.broadcast %cst_17 : f32 to vector<128x128xf32>
    %38 = arith.addf %37, %34 : vector<128x128xf32>
    %39 = arith.mulf %36, %38 : vector<128x128xf32>
    %cst_18 = arith.constant 1.000000e+00 : f32
    %40 = vector.broadcast %cst_18 : f32 to vector<128x128xf32>
    %41 = arith.subf %39, %40 : vector<128x128xf32>
    %42 = arith.mulf %31, %41 : vector<128x128xf32>
    %cst_19 = arith.constant 1.000000e+00 : f32
    %43 = vector.broadcast %cst_19 : f32 to vector<128x128xf32>
    %44 = arith.addf %39, %43 : vector<128x128xf32>
    %45 = tpu.reciprocal %44 {approx = true} : vector<128x128xf32> -> vector<128x128xf32>
    %46 = arith.mulf %42, %45 : vector<128x128xf32>
    %47 = arith.truncf %46 : vector<128x128xf32> to vector<128x128xbf16>
    %c0_20 = arith.constant 0 : index
    %c0_21 = arith.constant 0 : index
    %48 = vector.load %arg5[%c0_20, %c0_21] : memref<128x128xbf16, #tpu.memory_space<vmem>>, vector<128x128xbf16>
    tpu.vector_store %arg5[%c0_20, %c0_21], %47 {strides = array<i32>} : memref<128x128xbf16, #tpu.memory_space<vmem>>, vector<128x128xbf16>,
    return
  }
}

module attributes {stable_mosaic.version = 11 : i64} {
  func.func @_fused_conv_bn_mish_kernel(%arg0: memref<32x1152xbf16, #tpu.memory_space<vmem>>, %arg1: memref<1152x128xbf16, #tpu.memory_space<vmem>>, %arg2: memref<1x128xf32, #tpu.memory_space<vmem>>, %arg3: memref<1x128xf32, #tpu.memory_space<vmem>>, %arg4: memref<1x128xf32, #tpu.memory_space<vmem>>, %arg5: memref<32x128xbf16, #tpu.memory_space<vmem>>) attributes {dimension_semantics = [], scalar_prefetch = 0 : i64, scratch_operands = 0 : i64, tpu.core_type = #tpu.core_type<tc>} {
    %c0 = arith.constant 0 : index
    %c0_0 = arith.constant 0 : index
    %0 = vector.load %arg0[%c0, %c0_0] : memref<32x1152xbf16, #tpu.memory_space<vmem>>, vector<32x1152xbf16>
    %c0_1 = arith.constant 0 : index
    %c0_2 = arith.constant 0 : index
    %1 = vector.load %arg1[%c0_1, %c0_2] : memref<1152x128xbf16, #tpu.memory_space<vmem>>, vector<1152x128xbf16>
    %cst = arith.constant dense<0.000000e+00> : vector<32x128xf32>
    %2 = tpu.matmul %0, %1, %cst {dimension_numbers = #tpu.dot_dimension_numbers<[1], [0], [0], [1], [0, 0, 1, 1], [], []>} : vector<32x1152xbf16>, vector<1152x128xbf16>, vector<32x128xf32> -> vector<32x128xf32>
    %c0_3 = arith.constant 0 : index
    %c0_4 = arith.constant 0 : index
    %3 = vector.load %arg2[%c0_3, %c0_4] : memref<1x128xf32, #tpu.memory_space<vmem>>, vector<1x128xf32>
    %4 = vector.broadcast %3 : vector<1x128xf32> to vector<32x128xf32>
    %5 = arith.addf %2, %4 : vector<32x128xf32>
    %cst_5 = arith.constant dense<0.000000e+00> : vector<128xf32>
    %6 = vector.multi_reduction <add>, %5, %cst_5 [0] : vector<32x128xf32> to vector<128xf32>
    %7 = vector.shape_cast %6 : vector<128xf32> to vector<1x128xf32>
    %cst_6 = arith.constant 3.125000e-02 : f32
    %8 = vector.broadcast %cst_6 : f32 to vector<1x128xf32>
    %9 = arith.mulf %7, %8 : vector<1x128xf32>
    %10 = arith.mulf %5, %5 : vector<32x128xf32>
    %cst_7 = arith.constant dense<0.000000e+00> : vector<128xf32>
    %11 = vector.multi_reduction <add>, %10, %cst_7 [0] : vector<32x128xf32> to vector<128xf32>
    %12 = vector.shape_cast %11 : vector<128xf32> to vector<1x128xf32>
    %cst_8 = arith.constant 3.125000e-02 : f32
    %13 = vector.broadcast %cst_8 : f32 to vector<1x128xf32>
    %14 = arith.mulf %12, %13 : vector<1x128xf32>
    %15 = arith.mulf %9, %9 : vector<1x128xf32>
    %16 = arith.subf %14, %15 : vector<1x128xf32>
    %cst_9 = arith.constant 0.000000e+00 : f32
    %17 = vector.broadcast %cst_9 : f32 to vector<1x128xf32>
    %18 = arith.maximumf %16, %17 : vector<1x128xf32>
    %c0_10 = arith.constant 0 : index
    %c0_11 = arith.constant 0 : index
    %19 = vector.load %arg3[%c0_10, %c0_11] : memref<1x128xf32, #tpu.memory_space<vmem>>, vector<1x128xf32>
    %20 = vector.broadcast %9 : vector<1x128xf32> to vector<32x128xf32>
    %21 = arith.subf %5, %20 : vector<32x128xf32>
    %22 = vector.broadcast %19 : vector<1x128xf32> to vector<32x128xf32>
    %23 = arith.mulf %22, %21 : vector<32x128xf32>
    %cst_12 = arith.constant 9.99999974E-6 : f32
    %24 = vector.broadcast %cst_12 : f32 to vector<1x128xf32>
    %25 = arith.addf %18, %24 : vector<1x128xf32>
    %26 = math.rsqrt %25 : vector<1x128xf32>
    %27 = vector.broadcast %26 : vector<1x128xf32> to vector<32x128xf32>
    %28 = arith.mulf %23, %27 : vector<32x128xf32>
    %c0_13 = arith.constant 0 : index
    %c0_14 = arith.constant 0 : index
    %29 = vector.load %arg4[%c0_13, %c0_14] : memref<1x128xf32, #tpu.memory_space<vmem>>, vector<1x128xf32>
    %30 = vector.broadcast %29 : vector<1x128xf32> to vector<32x128xf32>
    %31 = arith.addf %28, %30 : vector<32x128xf32>
    %cst_15 = arith.constant 2.000000e+01 : f32
    %32 = vector.broadcast %cst_15 : f32 to vector<32x128xf32>
    %33 = arith.minimumf %31, %32 : vector<32x128xf32>
    %34 = math.exp %33 : vector<32x128xf32>
    %cst_16 = arith.constant 1.000000e+00 : f32
    %35 = vector.broadcast %cst_16 : f32 to vector<32x128xf32>
    %36 = arith.addf %35, %34 : vector<32x128xf32>
    %cst_17 = arith.constant 1.000000e+00 : f32
    %37 = vector.broadcast %cst_17 : f32 to vector<32x128xf32>
    %38 = arith.addf %37, %34 : vector<32x128xf32>
    %39 = arith.mulf %36, %38 : vector<32x128xf32>
    %cst_18 = arith.constant 1.000000e+00 : f32
    %40 = vector.broadcast %cst_18 : f32 to vector<32x128xf32>
    %41 = arith.subf %39, %40 : vector<32x128xf32>
    %42 = arith.mulf %31, %41 : vector<32x128xf32>
    %cst_19 = arith.constant 1.000000e+00 : f32
    %43 = vector.broadcast %cst_19 : f32 to vector<32x128xf32>
    %44 = arith.addf %39, %43 : vector<32x128xf32>
    %45 = tpu.reciprocal %44 {approx = true} : vector<32x128xf32> -> vector<32x128xf32>
    %46 = arith.mulf %42, %45 : vector<32x128xf32>
    %47 = arith.truncf %46 : vector<32x128xf32> to vector<32x128xbf16>
    %c0_20 = arith.constant 0 : index
    %c0_21 = arith.constant 0 : index
    %48 = vector.load %arg5[%c0_20, %c0_21] : memref<32x128xbf16, #tpu.memory_space<vmem>>, vector<32x128xbf16>
    tpu.vector_store %arg5[%c0_20, %c0_21], %47 {strides = array<i32>} : memref<32x128xbf16, #tpu.memory_space<vmem>>, vector<32x128xbf16>,
    return
  }
}

module attributes {stable_mosaic.version = 11 : i64} {
  func.func @_fused_conv_bn_mish_kernel(%arg0: memref<8x1152xbf16, #tpu.memory_space<vmem>>, %arg1: memref<1152x128xbf16, #tpu.memory_space<vmem>>, %arg2: memref<1x128xf32, #tpu.memory_space<vmem>>, %arg3: memref<1x128xf32, #tpu.memory_space<vmem>>, %arg4: memref<1x128xf32, #tpu.memory_space<vmem>>, %arg5: memref<8x128xbf16, #tpu.memory_space<vmem>>) attributes {dimension_semantics = [], scalar_prefetch = 0 : i64, scratch_operands = 0 : i64, tpu.core_type = #tpu.core_type<tc>} {
    %c0 = arith.constant 0 : index
    %c0_0 = arith.constant 0 : index
    %0 = vector.load %arg0[%c0, %c0_0] : memref<8x1152xbf16, #tpu.memory_space<vmem>>, vector<8x1152xbf16>
    %c0_1 = arith.constant 0 : index
    %c0_2 = arith.constant 0 : index
    %1 = vector.load %arg1[%c0_1, %c0_2] : memref<1152x128xbf16, #tpu.memory_space<vmem>>, vector<1152x128xbf16>
    %cst = arith.constant dense<0.000000e+00> : vector<8x128xf32>
    %2 = tpu.matmul %0, %1, %cst {dimension_numbers = #tpu.dot_dimension_numbers<[1], [0], [0], [1], [0, 0, 1, 1], [], []>} : vector<8x1152xbf16>, vector<1152x128xbf16>, vector<8x128xf32> -> vector<8x128xf32>
    %c0_3 = arith.constant 0 : index
    %c0_4 = arith.constant 0 : index
    %3 = vector.load %arg2[%c0_3, %c0_4] : memref<1x128xf32, #tpu.memory_space<vmem>>, vector<1x128xf32>
    %4 = vector.broadcast %3 : vector<1x128xf32> to vector<8x128xf32>
    %5 = arith.addf %2, %4 : vector<8x128xf32>
    %cst_5 = arith.constant dense<0.000000e+00> : vector<128xf32>
    %6 = vector.multi_reduction <add>, %5, %cst_5 [0] : vector<8x128xf32> to vector<128xf32>
    %7 = vector.shape_cast %6 : vector<128xf32> to vector<1x128xf32>
    %cst_6 = arith.constant 1.250000e-01 : f32
    %8 = vector.broadcast %cst_6 : f32 to vector<1x128xf32>
    %9 = arith.mulf %7, %8 : vector<1x128xf32>
    %10 = arith.mulf %5, %5 : vector<8x128xf32>
    %cst_7 = arith.constant dense<0.000000e+00> : vector<128xf32>
    %11 = vector.multi_reduction <add>, %10, %cst_7 [0] : vector<8x128xf32> to vector<128xf32>
    %12 = vector.shape_cast %11 : vector<128xf32> to vector<1x128xf32>
    %cst_8 = arith.constant 1.250000e-01 : f32
    %13 = vector.broadcast %cst_8 : f32 to vector<1x128xf32>
    %14 = arith.mulf %12, %13 : vector<1x128xf32>
    %15 = arith.mulf %9, %9 : vector<1x128xf32>
    %16 = arith.subf %14, %15 : vector<1x128xf32>
    %cst_9 = arith.constant 0.000000e+00 : f32
    %17 = vector.broadcast %cst_9 : f32 to vector<1x128xf32>
    %18 = arith.maximumf %16, %17 : vector<1x128xf32>
    %c0_10 = arith.constant 0 : index
    %c0_11 = arith.constant 0 : index
    %19 = vector.load %arg3[%c0_10, %c0_11] : memref<1x128xf32, #tpu.memory_space<vmem>>, vector<1x128xf32>
    %20 = vector.broadcast %9 : vector<1x128xf32> to vector<8x128xf32>
    %21 = arith.subf %5, %20 : vector<8x128xf32>
    %22 = vector.broadcast %19 : vector<1x128xf32> to vector<8x128xf32>
    %23 = arith.mulf %22, %21 : vector<8x128xf32>
    %cst_12 = arith.constant 9.99999974E-6 : f32
    %24 = vector.broadcast %cst_12 : f32 to vector<1x128xf32>
    %25 = arith.addf %18, %24 : vector<1x128xf32>
    %26 = math.rsqrt %25 : vector<1x128xf32>
    %27 = vector.broadcast %26 : vector<1x128xf32> to vector<8x128xf32>
    %28 = arith.mulf %23, %27 : vector<8x128xf32>
    %c0_13 = arith.constant 0 : index
    %c0_14 = arith.constant 0 : index
    %29 = vector.load %arg4[%c0_13, %c0_14] : memref<1x128xf32, #tpu.memory_space<vmem>>, vector<1x128xf32>
    %30 = vector.broadcast %29 : vector<1x128xf32> to vector<8x128xf32>
    %31 = arith.addf %28, %30 : vector<8x128xf32>
    %cst_15 = arith.constant 2.000000e+01 : f32
    %32 = vector.broadcast %cst_15 : f32 to vector<8x128xf32>
    %33 = arith.minimumf %31, %32 : vector<8x128xf32>
    %34 = math.exp %33 : vector<8x128xf32>
    %cst_16 = arith.constant 1.000000e+00 : f32
    %35 = vector.broadcast %cst_16 : f32 to vector<8x128xf32>
    %36 = arith.addf %35, %34 : vector<8x128xf32>
    %cst_17 = arith.constant 1.000000e+00 : f32
    %37 = vector.broadcast %cst_17 : f32 to vector<8x128xf32>
    %38 = arith.addf %37, %34 : vector<8x128xf32>
    %39 = arith.mulf %36, %38 : vector<8x128xf32>
    %cst_18 = arith.constant 1.000000e+00 : f32
    %40 = vector.broadcast %cst_18 : f32 to vector<8x128xf32>
    %41 = arith.subf %39, %40 : vector<8x128xf32>
    %42 = arith.mulf %31, %41 : vector<8x128xf32>
    %cst_19 = arith.constant 1.000000e+00 : f32
    %43 = vector.broadcast %cst_19 : f32 to vector<8x128xf32>
    %44 = arith.addf %39, %43 : vector<8x128xf32>
    %45 = tpu.reciprocal %44 {approx = true} : vector<8x128xf32> -> vector<8x128xf32>
    %46 = arith.mulf %42, %45 : vector<8x128xf32>
    %47 = arith.truncf %46 : vector<8x128xf32> to vector<8x128xbf16>
    %c0_20 = arith.constant 0 : index
    %c0_21 = arith.constant 0 : index
    %48 = vector.load %arg5[%c0_20, %c0_21] : memref<8x128xbf16, #tpu.memory_space<vmem>>, vector<8x128xbf16>
    tpu.vector_store %arg5[%c0_20, %c0_21], %47 {strides = array<i32>} : memref<8x128xbf16, #tpu.memory_space<vmem>>, vector<8x128xbf16>,
    return
  }
}

module attributes {stable_mosaic.version = 11 : i64} {
  func.func @_fused_conv_bn_mish_kernel(%arg0: memref<2x1152xbf16, #tpu.memory_space<vmem>>, %arg1: memref<1152x128xbf16, #tpu.memory_space<vmem>>, %arg2: memref<1x128xf32, #tpu.memory_space<vmem>>, %arg3: memref<1x128xf32, #tpu.memory_space<vmem>>, %arg4: memref<1x128xf32, #tpu.memory_space<vmem>>, %arg5: memref<2x128xbf16, #tpu.memory_space<vmem>>) attributes {dimension_semantics = [], scalar_prefetch = 0 : i64, scratch_operands = 0 : i64, tpu.core_type = #tpu.core_type<tc>} {
    %c0 = arith.constant 0 : index
    %c0_0 = arith.constant 0 : index
    %0 = vector.load %arg0[%c0, %c0_0] : memref<2x1152xbf16, #tpu.memory_space<vmem>>, vector<2x1152xbf16>
    %c0_1 = arith.constant 0 : index
    %c0_2 = arith.constant 0 : index
    %1 = vector.load %arg1[%c0_1, %c0_2] : memref<1152x128xbf16, #tpu.memory_space<vmem>>, vector<1152x128xbf16>
    %cst = arith.constant dense<0.000000e+00> : vector<2x128xf32>
    %2 = tpu.matmul %0, %1, %cst {dimension_numbers = #tpu.dot_dimension_numbers<[1], [0], [0], [1], [0, 0, 1, 1], [], []>} : vector<2x1152xbf16>, vector<1152x128xbf16>, vector<2x128xf32> -> vector<2x128xf32>
    %c0_3 = arith.constant 0 : index
    %c0_4 = arith.constant 0 : index
    %3 = vector.load %arg2[%c0_3, %c0_4] : memref<1x128xf32, #tpu.memory_space<vmem>>, vector<1x128xf32>
    %4 = vector.broadcast %3 : vector<1x128xf32> to vector<2x128xf32>
    %5 = arith.addf %2, %4 : vector<2x128xf32>
    %cst_5 = arith.constant dense<0.000000e+00> : vector<128xf32>
    %6 = vector.multi_reduction <add>, %5, %cst_5 [0] : vector<2x128xf32> to vector<128xf32>
    %7 = vector.shape_cast %6 : vector<128xf32> to vector<1x128xf32>
    %cst_6 = arith.constant 5.000000e-01 : f32
    %8 = vector.broadcast %cst_6 : f32 to vector<1x128xf32>
    %9 = arith.mulf %7, %8 : vector<1x128xf32>
    %10 = arith.mulf %5, %5 : vector<2x128xf32>
    %cst_7 = arith.constant dense<0.000000e+00> : vector<128xf32>
    %11 = vector.multi_reduction <add>, %10, %cst_7 [0] : vector<2x128xf32> to vector<128xf32>
    %12 = vector.shape_cast %11 : vector<128xf32> to vector<1x128xf32>
    %cst_8 = arith.constant 5.000000e-01 : f32
    %13 = vector.broadcast %cst_8 : f32 to vector<1x128xf32>
    %14 = arith.mulf %12, %13 : vector<1x128xf32>
    %15 = arith.mulf %9, %9 : vector<1x128xf32>
    %16 = arith.subf %14, %15 : vector<1x128xf32>
    %cst_9 = arith.constant 0.000000e+00 : f32
    %17 = vector.broadcast %cst_9 : f32 to vector<1x128xf32>
    %18 = arith.maximumf %16, %17 : vector<1x128xf32>
    %c0_10 = arith.constant 0 : index
    %c0_11 = arith.constant 0 : index
    %19 = vector.load %arg3[%c0_10, %c0_11] : memref<1x128xf32, #tpu.memory_space<vmem>>, vector<1x128xf32>
    %20 = vector.broadcast %9 : vector<1x128xf32> to vector<2x128xf32>
    %21 = arith.subf %5, %20 : vector<2x128xf32>
    %22 = vector.broadcast %19 : vector<1x128xf32> to vector<2x128xf32>
    %23 = arith.mulf %22, %21 : vector<2x128xf32>
    %cst_12 = arith.constant 9.99999974E-6 : f32
    %24 = vector.broadcast %cst_12 : f32 to vector<1x128xf32>
    %25 = arith.addf %18, %24 : vector<1x128xf32>
    %26 = math.rsqrt %25 : vector<1x128xf32>
    %27 = vector.broadcast %26 : vector<1x128xf32> to vector<2x128xf32>
    %28 = arith.mulf %23, %27 : vector<2x128xf32>
    %c0_13 = arith.constant 0 : index
    %c0_14 = arith.constant 0 : index
    %29 = vector.load %arg4[%c0_13, %c0_14] : memref<1x128xf32, #tpu.memory_space<vmem>>, vector<1x128xf32>
    %30 = vector.broadcast %29 : vector<1x128xf32> to vector<2x128xf32>
    %31 = arith.addf %28, %30 : vector<2x128xf32>
    %cst_15 = arith.constant 2.000000e+01 : f32
    %32 = vector.broadcast %cst_15 : f32 to vector<2x128xf32>
    %33 = arith.minimumf %31, %32 : vector<2x128xf32>
    %34 = math.exp %33 : vector<2x128xf32>
    %cst_16 = arith.constant 1.000000e+00 : f32
    %35 = vector.broadcast %cst_16 : f32 to vector<2x128xf32>
    %36 = arith.addf %35, %34 : vector<2x128xf32>
    %cst_17 = arith.constant 1.000000e+00 : f32
    %37 = vector.broadcast %cst_17 : f32 to vector<2x128xf32>
    %38 = arith.addf %37, %34 : vector<2x128xf32>
    %39 = arith.mulf %36, %38 : vector<2x128xf32>
    %cst_18 = arith.constant 1.000000e+00 : f32
    %40 = vector.broadcast %cst_18 : f32 to vector<2x128xf32>
    %41 = arith.subf %39, %40 : vector<2x128xf32>
    %42 = arith.mulf %31, %41 : vector<2x128xf32>
    %cst_19 = arith.constant 1.000000e+00 : f32
    %43 = vector.broadcast %cst_19 : f32 to vector<2x128xf32>
    %44 = arith.addf %39, %43 : vector<2x128xf32>
    %45 = tpu.reciprocal %44 {approx = true} : vector<2x128xf32> -> vector<2x128xf32>
    %46 = arith.mulf %42, %45 : vector<2x128xf32>
    %47 = arith.truncf %46 : vector<2x128xf32> to vector<2x128xbf16>
    %c0_20 = arith.constant 0 : index
    %c0_21 = arith.constant 0 : index
    %48 = vector.load %arg5[%c0_20, %c0_21] : memref<2x128xbf16, #tpu.memory_space<vmem>>, vector<2x128xbf16>
    tpu.vector_store %arg5[%c0_20, %c0_21], %47 {strides = array<i32>} : memref<2x128xbf16, #tpu.memory_space<vmem>>, vector<2x128xbf16>,
    return
  }
}

module attributes {stable_mosaic.version = 11 : i64} {
  func.func @_linear_kernel(%arg0: memref<2x128xbf16, #tpu.memory_space<vmem>>, %arg1: memref<128x128xbf16, #tpu.memory_space<vmem>>, %arg2: memref<1x128xf32, #tpu.memory_space<vmem>>, %arg3: memref<2x128xf32, #tpu.memory_space<vmem>>) attributes {dimension_semantics = [], scalar_prefetch = 0 : i64, scratch_operands = 0 : i64, tpu.core_type = #tpu.core_type<tc>} {
    %c0 = arith.constant 0 : index
    %c0_0 = arith.constant 0 : index
    %0 = vector.load %arg0[%c0, %c0_0] : memref<2x128xbf16, #tpu.memory_space<vmem>>, vector<2x128xbf16>
    %c0_1 = arith.constant 0 : index
    %c0_2 = arith.constant 0 : index
    %1 = vector.load %arg1[%c0_1, %c0_2] : memref<128x128xbf16, #tpu.memory_space<vmem>>, vector<128x128xbf16>
    %cst = arith.constant dense<0.000000e+00> : vector<2x128xf32>
    %2 = tpu.matmul %0, %1, %cst {dimension_numbers = #tpu.dot_dimension_numbers<[1], [1], [0], [0], [0, 0, 1, 0], [], []>} : vector<2x128xbf16>, vector<128x128xbf16>, vector<2x128xf32> -> vector<2x128xf32>
    %cst_3 = arith.constant 0.176776692 : f32
    %3 = vector.broadcast %cst_3 : f32 to vector<2x128xf32>
    %4 = arith.mulf %2, %3 : vector<2x128xf32>
    %c0_4 = arith.constant 0 : index
    %c0_5 = arith.constant 0 : index
    %5 = vector.load %arg2[%c0_4, %c0_5] : memref<1x128xf32, #tpu.memory_space<vmem>>, vector<1x128xf32>
    %6 = vector.broadcast %5 : vector<1x128xf32> to vector<2x128xf32>
    %7 = arith.addf %4, %6 : vector<2x128xf32>
    %c0_6 = arith.constant 0 : index
    %c0_7 = arith.constant 0 : index
    %8 = vector.load %arg3[%c0_6, %c0_7] : memref<2x128xf32, #tpu.memory_space<vmem>>, vector<2x128xf32>
    tpu.vector_store %arg3[%c0_6, %c0_7], %7 {strides = array<i32>} : memref<2x128xf32, #tpu.memory_space<vmem>>, vector<2x128xf32>,
    return
  }
}

</mosaic_0001>

<bundles_post_ra>
// kernel: full_down_and_flatten.5
= control target key start
LH: loop header
LB: loop body
LE: loop exit
PB: predicated region body
PF: predicated region fallthrough
CT: control target
= control target key end

     0   :  { %vm104_vm0 = vcmask 293888   ;;  %vm129_vm1 = vcmask 1041408   ;;  %s1134_s1 = inlined_call_operand.vmem [shape: bf16[36,128], index: 1, kind: input, shape index: {}]   ;;  %s1135_s0 = inlined_call_operand.vmem [shape: bf16[128,36], index: 0, kind: input, shape index: {}]   ;;  %s1136_s2 = inlined_call_operand.vmem [shape: f32[1,128], index: 2, kind: input, shape index: {}]   ;;  %s1137_s3 = inlined_call_operand.vmem [shape: f32[1,128], index: 3, kind: input, shape index: {}]   ;;  %s1138_s4 = inlined_call_operand.vmem [shape: f32[1,128], index: 4, kind: input, shape index: {}]   ;;  %s1139_s5 = inlined_call_operand.vmem [shape: bf16[128,128], index: 5, kind: output, shape index: {}]  }
   0x1   :  { %v775_v0 = vld [vmem:[%s1134_s1] sm:$0xff]   ;;  %v776_v1 = vld [vmem:[%s1134_s1 + $0x8] sm:$0xff]   ;;  %v777_v2 = vld [vmem:[%s1134_s1 + $0x10] ss:$0 sps:$4 sm:$0x33]  }
   0x2   :  { %745 = vmatprep.subr.bf16.mxu0 %v775_v0  ;;  %v778_v3 = vld [vmem:[%s1135_s0] sm:$0xff]   ;;  %767 = vmatprep.subr.bf16.mxu1 %v775_v0  ;;  %v131_v5 = vsel %vm129_vm1, %v777_v2, 0  ;;  %v779_v6 = vld [vmem:[%s1135_s0 + $0x8] sm:$0xff]   ;;  %v780_v8 = vld [vmem:[%s1135_s0 + $0x10] sm:$0xff]  }
   0x3   :  { %746 = vmatpush3.bf16.msra.mxu0 %v775_v0  ;;  %770 = vmatpush3.bf16.msra.mxu1 %v775_v0  ;;  %v782_v4 = vld [vmem:[%s1135_s0 + $0x20] sm:$0xff]   ;;  %v783_v7 = vld [vmem:[%s1135_s0 + $0x28] sm:$0xff]   ;;  %v784_v9 = vld [vmem:[%s1135_s0 + $0x30] sm:$0xff]  }
   0x4   :  { %747 = vmatprep.subr.bf16.mxu0 %v776_v1  ;;  %751 = vmatprep.mubr.msk.bf16.mxu0 %vm104_vm0, %v778_v3  ;;  %v781_v10 = vld [vmem:[%s1135_s0 + $0x18] sm:$0xff]   ;;  %v926_v12 = vld [vmem:[%s1136_s2] ss:$0 sm:$0xff] }
   0x5   :  { %768 = vmatprep.subr.bf16.mxu1 %v776_v1  ;;  %759 = vmatprep.mubr.msk.bf16.mxu1 %vm104_vm0, %v782_v4  ;;  %v785_v11 = vld [vmem:[%s1135_s0 + $0x38] sm:$0xff]  }
   0x7   :  { %748 = vmatpush3.bf16.msra.mxu0 %v776_v1  ;;  %771 = vmatpush3.bf16.msra.mxu1 %v776_v1 }
   0x8   :  { %773 = vmatprep.subr.msk.bf16.mxu0 %vm129_vm1, %v777_v2  ;;  %774 = vmatprep.subr.msk.bf16.mxu1 %vm129_vm1, %v777_v2 }
   0xb   :  { %750 = vmatpush3.bf16.msra.mxu0 %v131_v5  ;;  %772 = vmatpush3.bf16.msra.mxu1 %v131_v5 }
   0xe   :  { %752 = vmatmul.mubr.msk.bf16.vlgmr.msra.gmra.mrb[0].mxu0 %vm104_vm0, %v779_v6  ;;  %760 = vmatmul.mubr.msk.bf16.vlgmr.msra.gmra.mrb[0].mxu1 %vm104_vm0, %v783_v7 }
   0xf   :  { %755 = vmatprep.mubr.msk.bf16.mxu0 %vm104_vm0, %v780_v8  ;;  %763 = vmatprep.mubr.msk.bf16.mxu1 %vm104_vm0, %v784_v9 }
  0x16   :  { %756 = vmatmul.mubr.msk.bf16.gmra.mrb[4].mxu0 %vm104_vm0, %v781_v10  ;;  %764 = vmatmul.mubr.msk.bf16.gmra.mrb[4].mxu1 %vm104_vm0, %v785_v11 }
  0xe1   :  { %v753_v13 = vpop.f32.mrb[0].mxu0  ;;  %v761_v14 = vpop.f32.mrb[0].mxu1 }
  0xe2   :  { %v167_v15 = vpop.f32.mrb[1].mxu0  ;;  %v199_v16 = vpop.f32.mrb[1].mxu1  ;;  %v932_v22 = vadd.f32 %v753_v13, %v926_v12  ;;  %v985_v61 = vadd.f32 %v761_v14, %v926_v12 }
  0xe3   :  { %v929_v17 = vadd.f32 %v926_v12, %v167_v15  ;;  %v754_v18 = vpop.f32.mrb[2].mxu0  ;;  %v762_v19 = vpop.f32.mrb[2].mxu1  ;;  %v965_v48 = vadd.f32 %v926_v12, %v199_v16 }
  0xe4   :  { %v170_v20 = vpop.f32.mrb[3].mxu0  ;;  %v202_v21 = vpop.f32.mrb[3].mxu1  ;;  %v940_v25 = vadd.f32 %v754_v18, %v926_v12  ;;  %v254_v28 = vmul.f32 %v932_v22, %v932_v22  ;;  %v989_v0 = vadd.f32 %v762_v19, %v926_v12  ;;  %v262_v5 = vmul.f32 %v985_v61, %v985_v61 }
  0xe5   :  { %v935_v23 = vadd.f32 %v926_v12, %v170_v20  ;;  %v252_v24 = vmul.f32 %v929_v17, %v929_v17  ;;  %v260_v56 = vmul.f32 %v965_v48, %v965_v48  ;;  %v982_v60 = vadd.f32 %v926_v12, %v202_v21 }
  0xe6   :  { %v255_v35 = vmul.f32 %v940_v25, %v940_v25  ;;  %v263_v8 = vmul.f32 %v989_v0, %v989_v0 }
  0xe7   :  { %v230_v26 = vadd.f32 %v935_v23, %v929_v17  ;;  %v253_v27 = vmul.f32 %v935_v23, %v935_v23  ;;  %v261_v3 = vmul.f32 %v982_v60, %v982_v60 }
  0xe9   :  { %v231_v29 = vadd.f32 %v230_v26, %v932_v22  ;;  %v268_v30 = vadd.f32 %v253_v27, %v252_v24  ;;  %v757_v31 = vpop.f32.mrb[4].mxu0  ;;  %v765_v32 = vpop.f32.mrb[4].mxu1 }
  0xea   :  { %v183_v33 = vpop.f32.mrb[5].mxu0  ;;  %v215_v34 = vpop.f32.mrb[5].mxu1  ;;  %v956_v41 = vadd.f32 %v757_v31, %v926_v12  ;;  %v1009_v14 = vadd.f32 %v765_v32, %v926_v12 }
  0xeb   :  { %v269_v36 = vadd.f32 %v268_v30, %v254_v28  ;;  %v952_v37 = vadd.f32 %v926_v12, %v183_v33  ;;  %v232_v38 = vadd.f32 %v231_v29, %v940_v25  ;;  %v758_v39 = vpop.f32.mrb[6].mxu0  ;;  %v766_v40 = vpop.f32.mrb[6].mxu1  ;;  %v995_v4 = vadd.f32 %v926_v12, %v215_v34 }
  0xec   :  { %v186_v42 = vpop.f32.mrb[7].mxu0  ;;  %v218_v43 = vpop.f32.mrb[7].mxu1  ;;  %v968_v50 = vadd.f32 %v758_v39, %v926_v12  ;;  %v258_v53 = vmul.f32 %v956_v41, %v956_v41  ;;  %v1013_v19 = vadd.f32 %v766_v40, %v926_v12  ;;  %v266_v24 = vmul.f32 %v1009_v14, %v1009_v14 }
  0xed   :  { %v233_v44 = vadd.f32 %v232_v38, %v952_v37  ;;  %v256_v45 = vmul.f32 %v952_v37, %v952_v37  ;;  %v270_v46 = vadd.f32 %v269_v36, %v255_v35  ;;  %v962_v47 = vadd.f32 %v926_v12, %v186_v42 }
  0xee   :  { %v259_v57 = vmul.f32 %v968_v50, %v968_v50  ;;  %v264_v11 = vmul.f32 %v995_v4, %v995_v4  ;;  %v1006_v13 = vadd.f32 %v926_v12, %v218_v43  ;;  %v267_v28 = vmul.f32 %v1013_v19, %v1013_v19 }
  0xef   :  { %v271_v49 = vadd.f32 %v270_v46, %v256_v45  ;;  %v234_v51 = vadd.f32 %v233_v44, %v962_v47  ;;  %v257_v52 = vmul.f32 %v962_v47, %v962_v47 }
  0xf0   :  { %v265_v21 = vmul.f32 %v1006_v13, %v1006_v13 }
  0xf1   :  { %v235_v54 = vadd.f32 %v234_v51, %v956_v41  ;;  %v272_v55 = vadd.f32 %v271_v49, %v257_v52 }
  0xf3   :  { %v273_v58 = vadd.f32 %v272_v55, %v258_v53  ;;  %v236_v59 = vadd.f32 %v235_v54, %v968_v50 }
  0xf5   :  { %v237_v62 = vadd.f32 %v236_v59, %v965_v48  ;;  %v274_v63 = vadd.f32 %v273_v58, %v259_v57 }
  0xf7   :  { %v275_v1 = vadd.f32 %v274_v63, %v260_v56  ;;  %v238_v2 = vadd.f32 %v237_v62, %v982_v60 }
  0xf9   :  { %v239_v6 = vadd.f32 %v238_v2, %v985_v61  ;;  %v276_v7 = vadd.f32 %v275_v1, %v261_v3 }
  0xfb   :  { %v277_v9 = vadd.f32 %v276_v7, %v262_v5  ;;  %v240_v10 = vadd.f32 %v239_v6, %v989_v0 }
  0xfd   :  { %v241_v15 = vadd.f32 %v240_v10, %v995_v4  ;;  %v278_v16 = vadd.f32 %v277_v9, %v263_v8 }
  0xff   :  { %v279_v18 = vadd.f32 %v278_v16, %v264_v11  ;;  %v242_v20 = vadd.f32 %v241_v15, %v1006_v13 }
 0x101   :  { %v243_v26 = vadd.f32 %v242_v20, %v1009_v14  ;;  %v280_v27 = vadd.f32 %v279_v18, %v265_v21 }
 0x103   :  { %v244_v29 = vadd.f32 %v243_v26, %v1013_v19  ;;  %v281_v30 = vadd.f32 %v280_v27, %v266_v24 }
 0x105   :  { %v245_v31 = vrot.slane %v244_v29, 4  ;;  %v282_v12 = vadd.f32 %v281_v30, %v267_v28 }
 0x107   :  { %v246_v32 = vadd.f32 %v245_v31, %v244_v29  ;;  %v283_v33 = vrot.slane %v282_v12, 4 }
 0x109   :  { %v247_v34 = vrot.slane %v246_v32, 2  ;;  %v284_v35 = vadd.f32 %v283_v33, %v282_v12 }
 0x10b   :  { %v248_v36 = vadd.f32 %v247_v34, %v246_v32  ;;  %v285_v38 = vrot.slane %v284_v35, 2 }
 0x10d   :  { %v249_v39 = vrot.slane %v248_v36, 1  ;;  %v286_v40 = vadd.f32 %v285_v38, %v284_v35  ;;  %v638_v35 = vld [vmem:[%s1138_s4] ss:$0 sm:$0xff] }
 0x10f   :  { %v250_v42 = vadd.f32 %v249_v39, %v248_v36  ;;  %v287_v43 = vrot.slane %v286_v40, 1 }
 0x111   :  { %v251_v44 = vmul.f32 0.0078125, %v250_v42  ;;  %v288_v45 = vadd.f32 %v287_v43, %v286_v40 }
 0x113   :  { %v289_v46 = vmul.f32 0.0078125, %v288_v45  ;;  %v290_v49 = vmul.f32 %v251_v44, %v251_v44  ;;  %v294_v51 = vsub.f32 %v929_v17, %v251_v44  ;;  %v295_v52 = vsub.f32 %v935_v23, %v251_v44 }
 0x114   :  { %v296_v53 = vsub.f32 %v932_v22, %v251_v44  ;;  %v297_v54 = vsub.f32 %v940_v25, %v251_v44  ;;  %v298_v55 = vsub.f32 %v952_v37, %v251_v44  ;;  %v299_v56 = vsub.f32 %v962_v47, %v251_v44 }
 0x115   :  { %v291_v57 = vsub.f32 %v289_v46, %v290_v49  ;;  %v300_v58 = vsub.f32 %v956_v41, %v251_v44  ;;  %v301_v59 = vsub.f32 %v968_v50, %v251_v44  ;;  %v302_v62 = vsub.f32 %v965_v48, %v251_v44  ;;  %v637_v48 = vld [vmem:[%s1137_s3] ss:$0 sm:$0xff] }
 0x116   :  { %v303_v63 = vsub.f32 %v982_v60, %v251_v44  ;;  %v304_v17 = vsub.f32 %v985_v61, %v251_v44  ;;  %v305_v23 = vsub.f32 %v989_v0, %v251_v44  ;;  %v306_v22 = vsub.f32 %v995_v4, %v251_v44 }
 0x117   :  { %v307_v25 = vsub.f32 %v1006_v13, %v251_v44  ;;  %v308_v37 = vsub.f32 %v1009_v14, %v251_v44  ;;  %v309_v47 = vsub.f32 %v1013_v19, %v251_v44  ;;  %v292_v1 = vmax.f32 %v291_v57, 0.0 }
 0x118   :  { %v316_v50 = vmul.f32 %v637_v48, %v294_v51  ;;  %v317_v60 = vmul.f32 %v637_v48, %v295_v52  ;;  %v318_v61 = vmul.f32 %v637_v48, %v296_v53  ;;  %v319_v2 = vmul.f32 %v637_v48, %v297_v54 }
 0x119   :  { %v332_v41 = vadd.f32 1e-05, %v292_v1  ;;  %v320_v0 = vmul.f32 %v637_v48, %v298_v55  ;;  %v321_v3 = vmul.f32 %v637_v48, %v299_v56  ;;  %v322_v4 = vmul.f32 %v637_v48, %v300_v58 }
 0x11a   :  { %v323_v5 = vmul.f32 %v637_v48, %v301_v59  ;;  %v324_v6 = vmul.f32 %v637_v48, %v302_v62  ;;  %v325_v7 = vmul.f32 %v637_v48, %v303_v63  ;;  %v326_v8 = vmul.f32 %v637_v48, %v304_v17 }
 0x11b   :  { %786 = vrsqrt.f32 %v332_v41  ;;  %v327_v9 = vmul.f32 %v637_v48, %v305_v23  ;;  %v328_v11 = vmul.f32 %v637_v48, %v306_v22  ;;  %v329_v13 = vmul.f32 %v637_v48, %v307_v25 }
 0x11c   :  { %v330_v14 = vmul.f32 %v637_v48, %v308_v37  ;;  %v331_v15 = vmul.f32 %v637_v48, %v309_v47 }
 0x125   :  { %v787_v10 = vpop.eup %786 }
 0x126   :  { %v334_v16 = vmul.f32 %v787_v10, %v316_v50  ;;  %v335_v18 = vmul.f32 %v787_v10, %v317_v60  ;;  %v336_v19 = vmul.f32 %v787_v10, %v318_v61  ;;  %v337_v20 = vmul.f32 %v787_v10, %v319_v2 }
 0x127   :  { %v338_v21 = vmul.f32 %v787_v10, %v320_v0  ;;  %v339_v24 = vmul.f32 %v787_v10, %v321_v3  ;;  %v340_v26 = vmul.f32 %v787_v10, %v322_v4  ;;  %v341_v27 = vmul.f32 %v787_v10, %v323_v5 }
 0x128   :  { %v342_v28 = vmul.f32 %v787_v10, %v324_v6  ;;  %v343_v29 = vmul.f32 %v787_v10, %v325_v7  ;;  %v344_v30 = vmul.f32 %v787_v10, %v326_v8  ;;  %v345_v31 = vmul.f32 %v787_v10, %v327_v9 }
 0x129   :  { %v346_v12 = vmul.f32 %v787_v10, %v328_v11  ;;  %v347_v32 = vmul.f32 %v787_v10, %v329_v13  ;;  %v348_v33 = vmul.f32 %v787_v10, %v330_v14  ;;  %v349_v34 = vmul.f32 %v787_v10, %v331_v15 }
 0x12a   :  { %v1046_v36 = vadd.f32 %v638_v35, %v334_v16  ;;  %v1048_v38 = vadd.f32 %v638_v35, %v335_v18  ;;  %v1050_v39 = vadd.f32 %v638_v35, %v336_v19  ;;  %v1052_v40 = vadd.f32 %v638_v35, %v337_v20 }
 0x12b   :  { %v1054_v42 = vadd.f32 %v638_v35, %v338_v21  ;;  %v1057_v44 = vadd.f32 %v638_v35, %v339_v24  ;;  %v1060_v46 = vadd.f32 %v638_v35, %v340_v26  ;;  %v1063_v51 = vadd.f32 %v638_v35, %v341_v27 }
 0x12c   :  { %v373_v43 = vmin.f32 %v1046_v36, 20.0  ;;  %v374_v45 = vmin.f32 %v1048_v38, 20.0  ;;  %v375_v49 = vmin.f32 %v1050_v39, 20.0  ;;  %v376_v52 = vmin.f32 %v1052_v40, 20.0 }
 0x12d   :  { %v1066_v53 = vadd.f32 %v638_v35, %v342_v28  ;;  %v377_v54 = vmin.f32 %v1054_v42, 20.0  ;;  %v1069_v56 = vadd.f32 %v638_v35, %v343_v29  ;;  %v378_v57 = vmin.f32 %v1057_v44, 20.0 }
 0x12e   :  { %v389_v55 = vmul.f32 1.442695, %v373_v43  ;;  %v391_v58 = vmul.f32 1.442695, %v374_v45  ;;  %v1072_v59 = vadd.f32 %v638_v35, %v344_v30  ;;  %v379_v62 = vmin.f32 %v1060_v46, 20.0 }
 0x12f   :  { %v393_v63 = vmul.f32 1.442695, %v375_v49  ;;  %v1075_v17 = vadd.f32 %v638_v35, %v345_v31  ;;  %v380_v23 = vmin.f32 %v1063_v51, 20.0  ;;  %v395_v22 = vmul.f32 1.442695, %v376_v52 }
 0x130   :  { %v1078_v25 = vadd.f32 %v638_v35, %v346_v12  ;;  %v381_v37 = vmin.f32 %v1066_v53, 20.0  ;;  %788 = vpow2.f32 %v389_v55  ;;  %v397_v47 = vmul.f32 1.442695, %v377_v54 }
 0x131   :  { %v1081_v1 = vadd.f32 %v638_v35, %v347_v32  ;;  %v382_v41 = vmin.f32 %v1069_v56, 20.0  ;;  %790 = vpow2.f32 %v391_v58  ;;  %v399_v48 = vmul.f32 1.442695, %v378_v57 }
 0x132   :  { %v1084_v50 = vadd.f32 %v638_v35, %v348_v33  ;;  %v383_v60 = vmin.f32 %v1072_v59, 20.0  ;;  %792 = vpow2.f32 %v393_v63  ;;  %v401_v61 = vmul.f32 1.442695, %v379_v62 }
 0x133   :  { %v1087_v2 = vadd.f32 %v638_v35, %v349_v34  ;;  %v384_v0 = vmin.f32 %v1075_v17, 20.0  ;;  %794 = vpow2.f32 %v395_v22  ;;  %v403_v3 = vmul.f32 1.442695, %v380_v23 }
 0x134   :  { %v385_v4 = vmin.f32 %v1078_v25, 20.0  ;;  %796 = vpow2.f32 %v397_v47  ;;  %v405_v5 = vmul.f32 1.442695, %v381_v37  ;;  %v386_v6 = vmin.f32 %v1081_v1, 20.0 }
 0x135   :  { %798 = vpow2.f32 %v399_v48  ;;  %v407_v7 = vmul.f32 1.442695, %v382_v41  ;;  %v387_v8 = vmin.f32 %v1084_v50, 20.0  ;;  %v409_v9 = vmul.f32 1.442695, %v383_v60 }
 0x136   :  { %800 = vpow2.f32 %v401_v61  ;;  %v388_v10 = vmin.f32 %v1087_v2, 20.0  ;;  %v411_v11 = vmul.f32 1.442695, %v384_v0  ;;  %v413_v13 = vmul.f32 1.442695, %v385_v4 }
 0x137   :  { %802 = vpow2.f32 %v403_v3  ;;  %v415_v14 = vmul.f32 1.442695, %v386_v6  ;;  %v417_v16 = vmul.f32 1.442695, %v387_v8 }
 0x138   :  { %804 = vpow2.f32 %v405_v5  ;;  %v419_v19 = vmul.f32 1.442695, %v388_v10 }
 0x139   :  { %806 = vpow2.f32 %v407_v7 }
 0x13a   :  { %v789_v15 = vpop.eup %788  ;;  %808 = vpow2.f32 %v409_v9 }
 0x13b   :  { %v791_v18 = vpop.eup %790  ;;  %810 = vpow2.f32 %v411_v11  ;;  %v421_v24 = vadd.f32 1.0, %v789_v15 }
 0x13c   :  { %v793_v20 = vpop.eup %792  ;;  %812 = vpow2.f32 %v413_v13  ;;  %v422_v27 = vadd.f32 1.0, %v791_v18 }
 0x13d   :  { %v795_v21 = vpop.eup %794  ;;  %814 = vpow2.f32 %v415_v14  ;;  %v423_v29 = vadd.f32 1.0, %v793_v20  ;;  %v437_v33 = vmul.f32 %v421_v24, %v421_v24 }
 0x13e   :  { %v797_v26 = vpop.eup %796  ;;  %816 = vpow2.f32 %v417_v16  ;;  %v424_v31 = vadd.f32 1.0, %v795_v21  ;;  %v438_v43 = vmul.f32 %v422_v27, %v422_v27 }
 0x13f   :  { %v799_v28 = vpop.eup %798  ;;  %818 = vpow2.f32 %v419_v19  ;;  %v425_v32 = vadd.f32 1.0, %v797_v26  ;;  %v439_v52 = vmul.f32 %v423_v29, %v423_v29  ;;  %v485_v23 = vadd.f32 1.0, %v437_v33 }
 0x140   :  { %v801_v30 = vpop.eup %800  ;;  %v426_v35 = vadd.f32 1.0, %v799_v28  ;;  %v440_v57 = vmul.f32 %v424_v31, %v424_v31  ;;  %v486_v41 = vadd.f32 1.0, %v438_v43  ;;  %v639_v6 = vadd.f32 -1.0, %v437_v33 }
 0x141   :  { %v803_v12 = vpop.eup %802  ;;  %v427_v49 = vadd.f32 1.0, %v801_v30  ;;  %v441_v63 = vmul.f32 %v425_v32, %v425_v32  ;;  %v487_v0 = vadd.f32 1.0, %v439_v52  ;;  %820 = vrcp.f32 %v485_v23 }
 0x142   :  { %v805_v34 = vpop.eup %804  ;;  %v428_v55 = vadd.f32 1.0, %v803_v12  ;;  %v442_v47 = vmul.f32 %v426_v35, %v426_v35  ;;  %v488_v7 = vadd.f32 1.0, %v440_v57  ;;  %822 = vrcp.f32 %v486_v41 }
 0x143   :  { %v807_v45 = vpop.eup %806  ;;  %v429_v62 = vadd.f32 1.0, %v805_v34  ;;  %v443_v61 = vmul.f32 %v427_v49, %v427_v49  ;;  %v489_v11 = vadd.f32 1.0, %v441_v63  ;;  %824 = vrcp.f32 %v487_v0 }
 0x144   :  { %v809_v54 = vpop.eup %808  ;;  %v430_v37 = vadd.f32 1.0, %v807_v45  ;;  %v444_v5 = vmul.f32 %v428_v55, %v428_v55  ;;  %v490_v15 = vadd.f32 1.0, %v442_v47  ;;  %826 = vrcp.f32 %v488_v7 }
 0x145   :  { %v811_v58 = vpop.eup %810  ;;  %v431_v60 = vadd.f32 1.0, %v809_v54  ;;  %v445_v10 = vmul.f32 %v429_v62, %v429_v62  ;;  %v491_v19 = vadd.f32 1.0, %v443_v61  ;;  %v640_v27 = vadd.f32 -1.0, %v438_v43 }
 0x146   :  { %v813_v22 = vpop.eup %812  ;;  %v432_v4 = vadd.f32 1.0, %v811_v58  ;;  %v446_v14 = vmul.f32 %v430_v37, %v430_v37  ;;  %v492_v24 = vadd.f32 1.0, %v444_v5  ;;  %828 = vrcp.f32 %v489_v11 }
 0x147   :  { %v815_v48 = vpop.eup %814  ;;  %v433_v9 = vadd.f32 1.0, %v813_v22  ;;  %v447_v18 = vmul.f32 %v431_v60, %v431_v60  ;;  %v493_v28 = vadd.f32 1.0, %v445_v10  ;;  %v641_v30 = vadd.f32 -1.0, %v439_v52 }
 0x148   :  { %v817_v3 = vpop.eup %816  ;;  %v434_v13 = vadd.f32 1.0, %v815_v48  ;;  %v448_v21 = vmul.f32 %v432_v4, %v432_v4  ;;  %v494_v31 = vadd.f32 1.0, %v446_v14  ;;  %830 = vrcp.f32 %v490_v15 }
 0x149   :  { %v819_v8 = vpop.eup %818  ;;  %v435_v16 = vadd.f32 1.0, %v817_v3  ;;  %v449_v26 = vmul.f32 %v433_v9, %v433_v9  ;;  %v642_v32 = vadd.f32 -1.0, %v440_v57  ;;  %v495_v33 = vadd.f32 1.0, %v447_v18 }
 0x14a   :  { %v436_v20 = vadd.f32 1.0, %v819_v8  ;;  %v450_v29 = vmul.f32 %v434_v13, %v434_v13  ;;  %832 = vrcp.f32 %v491_v19  ;;  %v496_v35 = vadd.f32 1.0, %v448_v21 }
 0x14b   :  { %v451_v12 = vmul.f32 %v435_v16, %v435_v16  ;;  %834 = vrcp.f32 %v492_v24  ;;  %v643_v45 = vadd.f32 -1.0, %v441_v63  ;;  %v469_v49 = vmul.f32 %v639_v6, %v1046_v36  ;;  %v821_v52 = vpop.eup %820 }
 0x14c   :  { %v452_v34 = vmul.f32 %v436_v20, %v436_v20  ;;  %v497_v54 = vadd.f32 1.0, %v449_v26  ;;  %836 = vrcp.f32 %v493_v28  ;;  %v644_v55 = vadd.f32 -1.0, %v442_v47  ;;  %v823_v22 = vpop.eup %822 }
 0x14d   :  { %v470_v43 = vmul.f32 %v640_v27, %v1048_v38  ;;  %v498_v58 = vadd.f32 1.0, %v450_v29  ;;  %838 = vrcp.f32 %v494_v31  ;;  %v471_v62 = vmul.f32 %v641_v30, %v1050_v39  ;;  %v825_v36 = vpop.eup %824 }
 0x14e   :  { %v472_v57 = vmul.f32 %v642_v32, %v1052_v40  ;;  %v499_v23 = vadd.f32 1.0, %v451_v12  ;;  %840 = vrcp.f32 %v495_v33  ;;  %v645_v37 = vadd.f32 -1.0, %v443_v61  ;;  %v827_v60 = vpop.eup %826 }
 0x14f   :  { %v500_v41 = vadd.f32 1.0, %v452_v34  ;;  %842 = vrcp.f32 %v496_v35  ;;  %v517_v63 = vmul.f32 %v821_v52, %v469_v49  ;;  %v646_v48 = vadd.f32 -1.0, %v444_v5 }
 0x150   :  { %v473_v47 = vmul.f32 %v643_v45, %v1054_v42  ;;  %844 = vrcp.f32 %v497_v54  ;;  %v518_v38 = vmul.f32 %v823_v22, %v470_v43  ;;  %v647_v0 = vadd.f32 -1.0, %v445_v10  ;;  %v829_v40 = vpop.eup %828 }
 0x151   :  { %v474_v3 = vmul.f32 %v644_v55, %v1057_v44  ;;  %846 = vrcp.f32 %v498_v58  ;;  %v519_v39 = vmul.f32 %v825_v36, %v471_v62  ;;  %v648_v4 = vadd.f32 -1.0, %v446_v14 }
 0x152   :  { %848 = vrcp.f32 %v499_v23  ;;  %v520_v6 = vmul.f32 %v827_v60, %v472_v57  ;;  %v690_v61 = vpack.c.bf16 %v518_v38, %v517_v63  ;;  %v831_v7 = vpop.eup %830  ;;  %v649_v8 = vadd.f32 -1.0, %v447_v18 }
 0x153   :  { %v475_v9 = vmul.f32 %v645_v37, %v1060_v46  ;;  %850 = vrcp.f32 %v500_v41  ;;  %v521_v5 = vmul.f32 %v829_v40, %v473_v47  ;;  %v650_v11 = vadd.f32 -1.0, %v448_v21 }
 0x154   :  { %v833_v42 = vpop.eup %832  ;;  %v476_v13 = vmul.f32 %v646_v48, %v1063_v51  ;;  %v522_v10 = vmul.f32 %v831_v7, %v474_v3  ;;  %691 = vst [vmem:[%s1139_s5] sm:$0xff] %v690_v61   ;;  %v695_v44 = vpack.c.bf16 %v520_v6, %v519_v39  ;;  %v651_v15 = vadd.f32 -1.0, %v449_v26 }
 0x155   :  { %v835_v14 = vpop.eup %834  ;;  %v477_v16 = vmul.f32 %v647_v0, %v1066_v53  ;;  %v523_v19 = vmul.f32 %v833_v42, %v475_v9  ;;  %v652_v20 = vadd.f32 -1.0, %v450_v29  ;;  %v478_v46 = vmul.f32 %v648_v4, %v1069_v56 }
 0x156   :  { %v837_v18 = vpop.eup %836  ;;  %v524_v24 = vmul.f32 %v835_v14, %v476_v13  ;;  %727 = vst [vmem:[%s1139_s5 + $0x8] sm:$0xff] %v695_v44   ;;  %v700_v51 = vpack.c.bf16 %v522_v10, %v521_v5  ;;  %v653_v27 = vadd.f32 -1.0, %v451_v12  ;;  %v479_v28 = vmul.f32 %v649_v8, %v1072_v59 }
 0x157   :  { %v839_v21 = vpop.eup %838  ;;  %v525_v30 = vmul.f32 %v837_v18, %v477_v16  ;;  %v654_v26 = vadd.f32 -1.0, %v452_v34  ;;  %v480_v53 = vmul.f32 %v650_v11, %v1075_v17  ;;  %v481_v33 = vmul.f32 %v651_v15, %v1078_v25 }
 0x158   :  { %v841_v31 = vpop.eup %840  ;;  %v526_v32 = vmul.f32 %v839_v21, %v478_v46  ;;  %728 = vst [vmem:[%s1139_s5 + $0x10] sm:$0xff] %v700_v51   ;;  %v705_v56 = vpack.c.bf16 %v524_v24, %v523_v19  ;;  %v482_v12 = vmul.f32 %v652_v20, %v1081_v1  ;;  %v483_v34 = vmul.f32 %v653_v27, %v1084_v50 }
 0x159   :  { %v843_v29 = vpop.eup %842  ;;  %v527_v35 = vmul.f32 %v841_v31, %v479_v28  ;;  %v484_v43 = vmul.f32 %v654_v26, %v1087_v2 }
 0x15a   :  { %v845_v45 = vpop.eup %844  ;;  %v528_v49 = vmul.f32 %v843_v29, %v480_v53  ;;  %729 = vst [vmem:[%s1139_s5 + $0x18] sm:$0xff] %v705_v56   ;;  %v710_v59 = vpack.c.bf16 %v526_v32, %v525_v30 }
 0x15b   :  { %v847_v17 = vpop.eup %846  ;;  %v529_v54 = vmul.f32 %v845_v45, %v481_v33 }
 0x15c   :  { %v849_v55 = vpop.eup %848  ;;  %v530_v58 = vmul.f32 %v847_v17, %v482_v12  ;;  %730 = vst [vmem:[%s1139_s5 + $0x20] sm:$0xff] %v710_v59   ;;  %v715_v25 = vpack.c.bf16 %v528_v49, %v527_v35 }
 0x15d   :  { %v851_v1 = vpop.eup %850  ;;  %v531_v52 = vmul.f32 %v849_v55, %v483_v34 }
 0x15e   :  { %v532_v62 = vmul.f32 %v851_v1, %v484_v43  ;;  %731 = vst [vmem:[%s1139_s5 + $0x28] sm:$0xff] %v715_v25   ;;  %v720_v57 = vpack.c.bf16 %v530_v58, %v529_v54 }
 0x160   :  { %732 = vst [vmem:[%s1139_s5 + $0x30] sm:$0xff] %v720_v57   ;;  %v725_v50 = vpack.c.bf16 %v532_v62, %v531_v52 }
 0x162   :  { %733 = vst [vmem:[%s1139_s5 + $0x38] sm:$0xff] %v725_v50  }

// kernel: full_down_and_flatten.6
= control target key start
LH: loop header
LB: loop body
LE: loop exit
PB: predicated region body
PF: predicated region fallthrough
CT: control target
= control target key end

     0   :  { %s1773_s1 = inlined_call_operand.vmem [shape: bf16[1152,128], index: 1, kind: input, shape index: {}]   ;;  %s1774_s0 = inlined_call_operand.vmem [shape: bf16[32,1152], index: 0, kind: input, shape index: {}]   ;;  %s1775_s2 = inlined_call_operand.vmem [shape: f32[1,128], index: 2, kind: input, shape index: {}]   ;;  %s1776_s3 = inlined_call_operand.vmem [shape: f32[1,128], index: 3, kind: input, shape index: {}]   ;;  %s1777_s4 = inlined_call_operand.vmem [shape: f32[1,128], index: 4, kind: input, shape index: {}]   ;;  %s1778_s5 = inlined_call_operand.vmem [shape: bf16[32,128], index: 5, kind: output, shape index: {}]  }
   0x1   :  { %v1342_v0 = vld [vmem:[%s1773_s1 + $0x40] sm:$0xff]   ;;  %v1346_v4 = vld [vmem:[%s1773_s1 + $0x48] sm:$0xff]   ;;  %v1350_v8 = vld [vmem:[%s1773_s1 + $0x50] sm:$0xff]  }
   0x2   :  { %v1343_v1 = vld [vmem:[%s1773_s1] sm:$0xff]   ;;  %1200 = vmatprep.subr.bf16.mxu0 %v1342_v0  ;;  %v1347_v5 = vld [vmem:[%s1773_s1 + $0x8] sm:$0xff]   ;;  %v1351_v9 = vld [vmem:[%s1773_s1 + $0x10] sm:$0xff]  }
   0x3   :  { %v1344_v2 = vld [vmem:[%s1773_s1 + $0xc0] sm:$0xff]   ;;  %1201 = vmatpush3.bf16.msra.mxu0 %v1343_v1  ;;  %v1348_v6 = vld [vmem:[%s1773_s1 + $0xc8] sm:$0xff]   ;;  %v1352_v10 = vld [vmem:[%s1773_s1 + $0xd0] sm:$0xff]  }
   0x4   :  { %v1345_v3 = vld [vmem:[%s1773_s1 + $0x80] sm:$0xff]   ;;  %1228 = vmatprep.subr.bf16.mxu1 %v1344_v2  ;;  %1202 = vmatprep.subr.bf16.mxu0 %v1346_v4  ;;  %v1349_v7 = vld [vmem:[%s1773_s1 + $0x88] sm:$0xff]   ;;  %v1353_v11 = vld [vmem:[%s1773_s1 + $0x90] sm:$0xff]  }
   0x5   :  { %1229 = vmatpush3.bf16.msra.mxu1 %v1345_v3  ;;  %v1354_v12 = vld [vmem:[%s1773_s1 + $0x58] sm:$0xff]   ;;  %v1358_v16 = vld [vmem:[%s1773_s1 + $0x60] sm:$0xff]   ;;  %v1362_v20 = vld [vmem:[%s1773_s1 + $0x68] sm:$0xff]  }
   0x6   :  { %1230 = vmatprep.subr.bf16.mxu1 %v1348_v6  ;;  %v1355_v13 = vld [vmem:[%s1773_s1 + $0x18] sm:$0xff]   ;;  %v1359_v17 = vld [vmem:[%s1773_s1 + $0x20] sm:$0xff]   ;;  %v1363_v21 = vld [vmem:[%s1773_s1 + $0x28] sm:$0xff]  }
   0x7   :  { %1203 = vmatpush3.bf16.msra.mxu0 %v1347_v5  ;;  %v1356_v14 = vld [vmem:[%s1773_s1 + $0xd8] sm:$0xff]   ;;  %v1360_v18 = vld [vmem:[%s1773_s1 + $0xe0] sm:$0xff]   ;;  %v1364_v22 = vld [vmem:[%s1773_s1 + $0xe8] sm:$0xff]  }
   0x8   :  { %1204 = vmatprep.subr.bf16.mxu0 %v1350_v8  ;;  %v1357_v15 = vld [vmem:[%s1773_s1 + $0x98] sm:$0xff]   ;;  %v1361_v19 = vld [vmem:[%s1773_s1 + $0xa0] sm:$0xff]   ;;  %v1365_v23 = vld [vmem:[%s1773_s1 + $0xa8] sm:$0xff]  }
   0x9   :  { %1231 = vmatpush3.bf16.msra.mxu1 %v1349_v7  ;;  %v1366_v24 = vld [vmem:[%s1773_s1 + $0x70] sm:$0xff]   ;;  %v1370_v28 = vld [vmem:[%s1773_s1 + $0x78] sm:$0xff]   ;;  %v1373_v31 = vld [vmem:[%s1774_s0] ss:$36 sps:$4 sm:$0xff]  }
   0xa   :  { %1232 = vmatprep.subr.bf16.mxu1 %v1352_v10  ;;  %v1367_v25 = vld [vmem:[%s1773_s1 + $0x30] sm:$0xff]   ;;  %v1371_v29 = vld [vmem:[%s1773_s1 + $0x38] sm:$0xff]   ;;  %v1375_v32 = vld [vmem:[%s1774_s0 + $0x4] ss:$36 sps:$4 sm:$0xff]  }
   0xb   :  { %1205 = vmatpush3.bf16.msra.mxu0 %v1351_v9  ;;  %v1368_v26 = vld [vmem:[%s1773_s1 + $0xf0] sm:$0xff]   ;;  %v1372_v30 = vld [vmem:[%s1773_s1 + $0xf8] sm:$0xff]   ;;  %748 = vmatprep.mubr.bf16.mxu0 %v1375_v32  ;;  %v1377_v34 = vld [vmem:[%s1773_s1 + $0x140] sm:$0xff]  }
   0xc   :  { %1206 = vmatprep.subr.bf16.mxu0 %v1354_v12  ;;  %v1369_v27 = vld [vmem:[%s1773_s1 + $0xb0] sm:$0xff]   ;;  %v1376_v33 = vld [vmem:[%s1773_s1 + $0xb8] sm:$0xff]   ;;  %v1378_v35 = vld [vmem:[%s1774_s0 + $0x8] ss:$36 sps:$4 sm:$0xff]  }
   0xd   :  { %1233 = vmatpush3.bf16.msra.mxu1 %v1353_v11  ;;  %v1380_v36 = vld [vmem:[%s1774_s0 + $0xc] ss:$36 sps:$4 sm:$0xff]   ;;  %v1381_v37 = vld [vmem:[%s1773_s1 + $0x100] sm:$0xff]   ;;  %v1392_v48 = vld [vmem:[%s1773_s1 + $0x158] sm:$0xff]  }
   0xe   :  { %1234 = vmatprep.subr.bf16.mxu1 %v1356_v14  ;;  %797 = vmatprep.mubr.bf16.mxu1 %v1380_v36  ;;  %v1382_v38 = vld [vmem:[%s1773_s1 + $0x1c0] sm:$0xff]   ;;  %v1384_v40 = vld [vmem:[%s1773_s1 + $0x148] sm:$0xff]   ;;  %v1388_v44 = vld [vmem:[%s1773_s1 + $0x150] sm:$0xff]  }
   0xf   :  { %1207 = vmatpush3.bf16.msra.mxu0 %v1355_v13  ;;  %v1383_v39 = vld [vmem:[%s1773_s1 + $0x180] sm:$0xff]   ;;  %v1385_v41 = vld [vmem:[%s1773_s1 + $0x108] sm:$0xff]   ;;  %v1389_v45 = vld [vmem:[%s1773_s1 + $0x110] sm:$0xff]  }
  0x10   :  { %1208 = vmatprep.subr.bf16.mxu0 %v1358_v16  ;;  %v1386_v42 = vld [vmem:[%s1773_s1 + $0x1c8] sm:$0xff]   ;;  %v1390_v46 = vld [vmem:[%s1773_s1 + $0x1d0] sm:$0xff]   ;;  %v1393_v49 = vld [vmem:[%s1773_s1 + $0x118] sm:$0xff]  }
  0x11   :  { %1235 = vmatpush3.bf16.msra.mxu1 %v1357_v15  ;;  %v1387_v43 = vld [vmem:[%s1773_s1 + $0x188] sm:$0xff]   ;;  %v1391_v47 = vld [vmem:[%s1773_s1 + $0x190] sm:$0xff]   ;;  %v1394_v50 = vld [vmem:[%s1773_s1 + $0x1d8] sm:$0xff]  }
  0x12   :  { %1236 = vmatprep.subr.bf16.mxu1 %v1360_v18  ;;  %v1395_v51 = vld [vmem:[%s1773_s1 + $0x198] sm:$0xff]   ;;  %v1396_v52 = vld [vmem:[%s1773_s1 + $0x160] sm:$0xff]   ;;  %v1400_v56 = vld [vmem:[%s1773_s1 + $0x168] sm:$0xff]  }
  0x13   :  { %1209 = vmatpush3.bf16.msra.mxu0 %v1359_v17  ;;  %v1397_v53 = vld [vmem:[%s1773_s1 + $0x120] sm:$0xff]   ;;  %v1401_v57 = vld [vmem:[%s1774_s0 + $0x4c] ss:$36 sps:$4 sm:$0xff]   ;;  %v1406_v61 = vld [vmem:[%s1774_s0 + $0x54] ss:$36 sps:$4 sm:$0xff]  }
  0x14   :  { %1210 = vmatprep.subr.bf16.mxu0 %v1362_v20  ;;  %v1398_v54 = vld [vmem:[%s1773_s1 + $0x1e0] sm:$0xff]   ;;  %v1403_v58 = vld [vmem:[%s1773_s1 + $0x128] sm:$0xff]   ;;  %v1409_v63 = vld [vmem:[%s1774_s0 + $0x50] ss:$36 sps:$4 sm:$0xff]  }
  0x15   :  { %1237 = vmatpush3.bf16.msra.mxu1 %v1361_v19  ;;  %v1399_v55 = vld [vmem:[%s1773_s1 + $0x1a0] sm:$0xff]   ;;  %v1404_v59 = vld [vmem:[%s1774_s0 + $0x48] ss:$36 sps:$4 sm:$0xff]   ;;  %v1410_v0 = vld [vmem:[%s1773_s1 + $0x170] sm:$0xff]  }
  0x16   :  { %1238 = vmatprep.subr.bf16.mxu1 %v1364_v22  ;;  %v1405_v60 = vld [vmem:[%s1773_s1 + $0x1e8] sm:$0xff]   ;;  %v1411_v1 = vld [vmem:[%s1773_s1 + $0x130] sm:$0xff]   ;;  %v1414_v4 = vld [vmem:[%s1773_s1 + $0x178] sm:$0xff]  }
  0x17   :  { %1211 = vmatpush3.bf16.msra.mxu0 %v1363_v21  ;;  %v1408_v62 = vld [vmem:[%s1773_s1 + $0x1a8] sm:$0xff]   ;;  %v1412_v2 = vld [vmem:[%s1773_s1 + $0x1f0] sm:$0xff]   ;;  %v1415_v5 = vld [vmem:[%s1773_s1 + $0x138] sm:$0xff]  }
  0x18   :  { %1212 = vmatprep.subr.bf16.mxu0 %v1366_v24  ;;  %v1413_v3 = vld [vmem:[%s1773_s1 + $0x1b0] sm:$0xff]   ;;  %v1416_v6 = vld [vmem:[%s1773_s1 + $0x1f8] sm:$0xff]   ;;  %v1421_v10 = vld [vmem:[%s1773_s1 + $0x200] sm:$0xff]  }
  0x19   :  { %1239 = vmatpush3.bf16.msra.mxu1 %v1365_v23  ;;  %v1417_v7 = vld [vmem:[%s1774_s0 + $0x10] ss:$36 sps:$4 sm:$0xff]   ;;  %v1420_v9 = vld [vmem:[%s1773_s1 + $0x1b8] sm:$0xff]   ;;  %v1425_v13 = vld [vmem:[%s1773_s1 + $0x208] sm:$0xff]  }
  0x1a   :  { %1240 = vmatprep.subr.bf16.mxu1 %v1368_v26  ;;  %v1419_v8 = vld [vmem:[%s1774_s0 + $0x14] ss:$36 sps:$4 sm:$0xff]   ;;  %v1424_v12 = vld [vmem:[%s1774_s0 + $0x1c] ss:$36 sps:$4 sm:$0xff]   ;;  %v1430_v17 = vld [vmem:[%s1774_s0 + $0x64] ss:$36 sps:$4 sm:$0xff]  }
  0x1b   :  { %1213 = vmatpush3.bf16.msra.mxu0 %v1367_v25  ;;  %v1422_v11 = vld [vmem:[%s1774_s0 + $0x18] ss:$36 sps:$4 sm:$0xff]   ;;  %v1429_v16 = vld [vmem:[%s1773_s1 + $0x210] sm:$0xff]   ;;  %v1432_v18 = vld [vmem:[%s1774_s0 + $0x60] ss:$36 sps:$4 sm:$0xff]  }
  0x1c   :  { %1214 = vmatprep.subr.bf16.mxu0 %v1370_v28  ;;  %v1426_v14 = vld [vmem:[%s1774_s0 + $0x5c] ss:$36 sps:$4 sm:$0xff]   ;;  %v1435_v22 = vld [vmem:[%s1773_s1 + $0x228] sm:$0xff]   ;;  %v1436_v23 = vld [vmem:[%s1773_s1 + $0x230] sm:$0xff]  }
  0x1d   :  { %1241 = vmatpush3.bf16.msra.mxu1 %v1369_v27  ;;  %v1428_v15 = vld [vmem:[%s1774_s0 + $0x58] ss:$36 sps:$4 sm:$0xff]   ;;  %v1434_v20 = vld [vmem:[%s1773_s1 + $0x220] sm:$0xff]   ;;  %v1439_v25 = vld [vmem:[%s1774_s0 + $0x68] ss:$36 sps:$4 sm:$0xff]  }
  0x1e   :  { %1242 = vmatprep.subr.bf16.mxu1 %v1372_v30  ;;  %v1433_v19 = vld [vmem:[%s1773_s1 + $0x218] sm:$0xff]   ;;  %v1438_v21 = vld [vmem:[%s1774_s0 + $0x20] ss:$36 sps:$4 sm:$0xff]  }
  0x1f   :  { %1215 = vmatpush3.bf16.msra.mxu0 %v1371_v29  ;;  %v1437_v24 = vld [vmem:[%s1773_s1 + $0x238] sm:$0xff]   ;;  %v1084_v27 = vld [vmem:[%s1775_s2] ss:$0 sm:$0xff] }
  0x20   :  { %1256 = vmatprep.subr.bf16.mxu0 %v1377_v34 }
  0x21   :  { %1243 = vmatpush3.bf16.msra.mxu1 %v1376_v33 }
  0x22   :  { %749 = vmatmul.mubr.bf16.vlgmr.msra.gmra.mrb[0].mxu0 %v1373_v31  ;;  %1284 = vmatprep.subr.bf16.mxu1 %v1382_v38 }
  0x23   :  { %1257 = vmatpush3.bf16.msra.mxu0 %v1381_v37  ;;  %756 = vmatprep.mubr.bf16.mxu0 %v1401_v57 }
  0x24   :  { %798 = vmatmul.mubr.bf16.vlgmr.msra.gmra.mrb[0].mxu1 %v1378_v35  ;;  %1258 = vmatprep.subr.bf16.mxu0 %v1384_v40 }
  0x25   :  { %1285 = vmatpush3.bf16.msra.mxu1 %v1383_v39  ;;  %805 = vmatprep.mubr.bf16.mxu1 %v1406_v61 }
  0x26   :  { %1286 = vmatprep.subr.bf16.mxu1 %v1386_v42 }
  0x27   :  { %1259 = vmatpush3.bf16.msra.mxu0 %v1385_v41 }
  0x28   :  { %1260 = vmatprep.subr.bf16.mxu0 %v1388_v44 }
  0x29   :  { %1287 = vmatpush3.bf16.msra.mxu1 %v1387_v43 }
  0x2a   :  { %1288 = vmatprep.subr.bf16.mxu1 %v1390_v46  ;;  %757 = vmatmul.mubr.bf16.gmra.mrb[4].mxu0 %v1404_v59 }
  0x2b   :  { %1261 = vmatpush3.bf16.msra.mxu0 %v1389_v45  ;;  %846 = vmatprep.mubr.bf16.mxu0 %v1419_v8 }
  0x2c   :  { %1262 = vmatprep.subr.bf16.mxu0 %v1392_v48  ;;  %806 = vmatmul.mubr.bf16.gmra.mrb[4].mxu1 %v1409_v63 }
  0x2d   :  { %1289 = vmatpush3.bf16.msra.mxu1 %v1391_v47  ;;  %895 = vmatprep.mubr.bf16.mxu1 %v1424_v12 }
  0x2e   :  { %1290 = vmatprep.subr.bf16.mxu1 %v1394_v50 }
  0x2f   :  { %1263 = vmatpush3.bf16.msra.mxu0 %v1393_v49 }
  0x30   :  { %1264 = vmatprep.subr.bf16.mxu0 %v1396_v52 }
  0x31   :  { %1291 = vmatpush3.bf16.msra.mxu1 %v1395_v51 }
  0x32   :  { %1292 = vmatprep.subr.bf16.mxu1 %v1398_v54 }
  0x33   :  { %1265 = vmatpush3.bf16.msra.mxu0 %v1397_v53 }
  0x34   :  { %1266 = vmatprep.subr.bf16.mxu0 %v1400_v56 }
  0x35   :  { %1293 = vmatpush3.bf16.msra.mxu1 %v1399_v55 }
  0x36   :  { %1294 = vmatprep.subr.bf16.mxu1 %v1405_v60 }
  0x37   :  { %1267 = vmatpush3.bf16.msra.mxu0 %v1403_v58 }
  0x38   :  { %1268 = vmatprep.subr.bf16.mxu0 %v1410_v0 }
  0x39   :  { %1295 = vmatpush3.bf16.msra.mxu1 %v1408_v62 }
  0x3a   :  { %1296 = vmatprep.subr.bf16.mxu1 %v1412_v2 }
  0x3b   :  { %1269 = vmatpush3.bf16.msra.mxu0 %v1411_v1 }
  0x3c   :  { %1270 = vmatprep.subr.bf16.mxu0 %v1414_v4 }
  0x3d   :  { %1297 = vmatpush3.bf16.msra.mxu1 %v1413_v3 }
  0x3e   :  { %1298 = vmatprep.subr.bf16.mxu1 %v1416_v6 }
  0x3f   :  { %1271 = vmatpush3.bf16.msra.mxu0 %v1415_v5 }
  0x40   :  { %1322 = vmatprep.subr.bf16.mxu0 %v1421_v10 }
  0x41   :  { %1299 = vmatpush3.bf16.msra.mxu1 %v1420_v9 }
  0x42   :  { %847 = vmatmul.mubr.bf16.vlgmr.msra.gmra.mrb[8].mxu0 %v1417_v7 }
  0x43   :  { %1323 = vmatpush3.bf16.msra.mxu0 %v1421_v10  ;;  %854 = vmatprep.mubr.bf16.mxu0 %v1426_v14 }
  0x44   :  { %896 = vmatmul.mubr.bf16.vlgmr.msra.gmra.mrb[8].mxu1 %v1422_v11  ;;  %1324 = vmatprep.subr.bf16.mxu0 %v1425_v13 }
  0x45   :  { %903 = vmatprep.mubr.bf16.mxu1 %v1430_v17 }
  0x47   :  { %1325 = vmatpush3.bf16.msra.mxu0 %v1425_v13 }
  0x48   :  { %1326 = vmatprep.subr.bf16.mxu0 %v1429_v16 }
  0x4a   :  { %855 = vmatmul.mubr.bf16.gmra.mrb[12].mxu0 %v1428_v15 }
  0x4b   :  { %1327 = vmatpush3.bf16.msra.mxu0 %v1429_v16  ;;  %1338 = vmatprep.mubr.bf16.mxu0 %v1438_v21 }
  0x4c   :  { %904 = vmatmul.mubr.bf16.gmra.mrb[12].mxu1 %v1432_v18  ;;  %1328 = vmatprep.subr.bf16.mxu0 %v1433_v19 }
  0x4f   :  { %1329 = vmatpush3.bf16.msra.mxu0 %v1433_v19 }
  0x50   :  { %1330 = vmatprep.subr.bf16.mxu0 %v1434_v20 }
  0x53   :  { %1331 = vmatpush3.bf16.msra.mxu0 %v1434_v20 }
  0x54   :  { %1332 = vmatprep.subr.bf16.mxu0 %v1435_v22 }
  0x57   :  { %1333 = vmatpush3.bf16.msra.mxu0 %v1435_v22 }
  0x58   :  { %1334 = vmatprep.subr.bf16.mxu0 %v1436_v23 }
  0x5b   :  { %1335 = vmatpush3.bf16.msra.mxu0 %v1436_v23 }
  0x5c   :  { %1336 = vmatprep.subr.bf16.mxu0 %v1437_v24 }
  0x5f   :  { %1337 = vmatpush3.bf16.msra.mxu0 %v1437_v24 }
  0x62   :  { %1339 = vmatmul.mubr.bf16.vlgmr.msra.gmra.mrb[16].mxu0 %v1439_v25 }
  0xf5   :  { %v1216_v26 = vpop.f32.mrb[0].mxu0 }
  0xf6   :  { %v1217_v28 = vpop.f32.mrb[1].mxu0 }
  0xf7   :  { %v1218_v29 = vadd.f32 %v1217_v28, %v1216_v26  ;;  %v1219_v30 = vpop.f32.mrb[2].mxu0  ;;  %v1244_v31 = vpop.f32.mrb[0].mxu1 }
  0xf8   :  { %v1220_v32 = vpop.f32.mrb[3].mxu0  ;;  %v1245_v35 = vpop.f32.mrb[1].mxu1 }
  0xf9   :  { %v751_v33 = vadd.f32 %v1218_v29, %v1084_v27  ;;  %v1221_v34 = vadd.f32 %v1220_v32, %v1219_v30  ;;  %v1246_v36 = vadd.f32 %v1245_v35, %v1244_v31  ;;  %v1247_v37 = vpop.f32.mrb[2].mxu1 }
  0xfa   :  { %v1248_v39 = vpop.f32.mrb[3].mxu1 }
  0xfb   :  { %v754_v38 = vadd.f32 %v1221_v34, %v1084_v27  ;;  %v800_v40 = vadd.f32 %v1246_v36, %v751_v33  ;;  %v1249_v41 = vadd.f32 %v1248_v39, %v1247_v37 }
  0xfd   :  { %v803_v42 = vadd.f32 %v1249_v41, %v754_v38  ;;  %v1222_v43 = vpop.f32.mrb[4].mxu0 }
  0xfe   :  { %v1223_v44 = vpop.f32.mrb[5].mxu0 }
  0xff   :  { %v1224_v45 = vadd.f32 %v1223_v44, %v1222_v43  ;;  %v1225_v46 = vpop.f32.mrb[6].mxu0  ;;  %v1250_v47 = vpop.f32.mrb[4].mxu1 }
 0x100   :  { %v1226_v48 = vpop.f32.mrb[7].mxu0  ;;  %v1251_v51 = vpop.f32.mrb[5].mxu1 }
 0x101   :  { %v759_v49 = vadd.f32 %v1224_v45, %v1084_v27  ;;  %v1227_v50 = vadd.f32 %v1226_v48, %v1225_v46  ;;  %v1252_v52 = vadd.f32 %v1251_v51, %v1250_v47  ;;  %v1253_v53 = vpop.f32.mrb[6].mxu1 }
 0x102   :  { %v1254_v55 = vpop.f32.mrb[7].mxu1 }
 0x103   :  { %v762_v54 = vadd.f32 %v1227_v50, %v1084_v27  ;;  %v808_v56 = vadd.f32 %v1252_v52, %v759_v49  ;;  %v1255_v57 = vadd.f32 %v1254_v55, %v1253_v53 }
 0x105   :  { %v811_v58 = vadd.f32 %v1255_v57, %v762_v54 }
 0x115   :  { %v1272_v59 = vpop.f32.mrb[8].mxu0 }
 0x116   :  { %v1273_v60 = vpop.f32.mrb[9].mxu0 }
 0x117   :  { %v1274_v61 = vadd.f32 %v1273_v60, %v1272_v59  ;;  %v1275_v62 = vpop.f32.mrb[10].mxu0  ;;  %v1300_v63 = vpop.f32.mrb[8].mxu1 }
 0x118   :  { %v1276_v0 = vpop.f32.mrb[11].mxu0  ;;  %v1301_v3 = vpop.f32.mrb[9].mxu1 }
 0x119   :  { %v849_v1 = vadd.f32 %v1274_v61, %v800_v40  ;;  %v1277_v2 = vadd.f32 %v1276_v0, %v1275_v62  ;;  %v1302_v4 = vadd.f32 %v1301_v3, %v1300_v63  ;;  %v1303_v5 = vpop.f32.mrb[10].mxu1  ;;  %v1175_v3 = vld [vmem:[%s1776_s3] ss:$0 sm:$0xff] }
 0x11a   :  { %v1304_v7 = vpop.f32.mrb[11].mxu1 }
 0x11b   :  { %v852_v6 = vadd.f32 %v1277_v2, %v803_v42  ;;  %v1305_v8 = vadd.f32 %v1304_v7, %v1303_v5  ;;  %v898_v9 = vadd.f32 %v1302_v4, %v849_v1 }
 0x11d   :  { %v1278_v10 = vpop.f32.mrb[12].mxu0  ;;  %v901_v12 = vadd.f32 %v1305_v8, %v852_v6 }
 0x11e   :  { %v1279_v11 = vpop.f32.mrb[13].mxu0 }
 0x11f   :  { %v1280_v13 = vadd.f32 %v1279_v11, %v1278_v10  ;;  %v1281_v14 = vpop.f32.mrb[14].mxu0  ;;  %v1306_v15 = vpop.f32.mrb[12].mxu1 }
 0x120   :  { %v1282_v16 = vpop.f32.mrb[15].mxu0  ;;  %v1307_v19 = vpop.f32.mrb[13].mxu1 }
 0x121   :  { %v857_v17 = vadd.f32 %v1280_v13, %v808_v56  ;;  %v1283_v18 = vadd.f32 %v1282_v16, %v1281_v14  ;;  %v1308_v20 = vadd.f32 %v1307_v19, %v1306_v15  ;;  %v1309_v21 = vpop.f32.mrb[14].mxu1 }
 0x122   :  { %v1310_v23 = vpop.f32.mrb[15].mxu1 }
 0x123   :  { %v860_v22 = vadd.f32 %v1283_v18, %v811_v58  ;;  %v1311_v24 = vadd.f32 %v1310_v23, %v1309_v21  ;;  %v906_v25 = vadd.f32 %v1308_v20, %v857_v17 }
 0x125   :  { %v909_v26 = vadd.f32 %v1311_v24, %v860_v22 }
 0x135   :  { %v1340_v27 = vpop.f32.mrb[16].mxu0 }
 0x136   :  { %v955_v28 = vadd.f32 %v1340_v27, %v906_v25  ;;  %v946_v29 = vpop.f32.mrb[17].mxu0 }
 0x137   :  { %v947_v30 = vadd.f32 %v946_v29, %v898_v9  ;;  %v1341_v31 = vpop.f32.mrb[18].mxu0  ;;  %v1176_v9 = vld [vmem:[%s1777_s4] ss:$0 sm:$0xff] }
 0x138   :  { %v958_v32 = vadd.f32 %v1341_v31, %v909_v26  ;;  %v949_v33 = vpop.f32.mrb[19].mxu0  ;;  %v973_v38 = vmul.f32 %v955_v28, %v955_v28 }
 0x139   :  { %v950_v34 = vadd.f32 %v949_v33, %v901_v12  ;;  %v971_v35 = vmul.f32 %v947_v30, %v947_v30 }
 0x13a   :  { %v974_v41 = vmul.f32 %v958_v32, %v958_v32 }
 0x13b   :  { %v961_v36 = vadd.f32 %v950_v34, %v947_v30  ;;  %v972_v37 = vmul.f32 %v950_v34, %v950_v34 }
 0x13d   :  { %v962_v39 = vadd.f32 %v961_v36, %v955_v28  ;;  %v975_v40 = vadd.f32 %v972_v37, %v971_v35 }
 0x13f   :  { %v963_v42 = vadd.f32 %v962_v39, %v958_v32  ;;  %v976_v43 = vadd.f32 %v975_v40, %v973_v38 }
 0x141   :  { %v964_v44 = vrot.slane %v963_v42, 4  ;;  %v977_v45 = vadd.f32 %v976_v43, %v974_v41 }
 0x143   :  { %v965_v46 = vadd.f32 %v964_v44, %v963_v42  ;;  %v978_v47 = vrot.slane %v977_v45, 4 }
 0x145   :  { %v966_v48 = vrot.slane %v965_v46, 2  ;;  %v979_v49 = vadd.f32 %v978_v47, %v977_v45 }
 0x147   :  { %v967_v50 = vadd.f32 %v966_v48, %v965_v46  ;;  %v980_v51 = vrot.slane %v979_v49, 2 }
 0x149   :  { %v968_v52 = vrot.slane %v967_v50, 1  ;;  %v981_v53 = vadd.f32 %v980_v51, %v979_v49 }
 0x14b   :  { %v969_v54 = vadd.f32 %v968_v52, %v967_v50  ;;  %v982_v55 = vrot.slane %v981_v53, 1 }
 0x14d   :  { %v970_v56 = vmul.f32 0.03125, %v969_v54  ;;  %v983_v57 = vadd.f32 %v982_v55, %v981_v53 }
 0x14f   :  { %v984_v58 = vmul.f32 0.03125, %v983_v57  ;;  %v985_v59 = vmul.f32 %v970_v56, %v970_v56  ;;  %v989_v60 = vsub.f32 %v947_v30, %v970_v56  ;;  %v990_v61 = vsub.f32 %v950_v34, %v970_v56 }
 0x150   :  { %v991_v62 = vsub.f32 %v955_v28, %v970_v56  ;;  %v992_v63 = vsub.f32 %v958_v32, %v970_v56 }
 0x151   :  { %v986_v0 = vsub.f32 %v984_v58, %v985_v59  ;;  %v999_v4 = vmul.f32 %v1175_v3, %v989_v60  ;;  %v1000_v5 = vmul.f32 %v1175_v3, %v990_v61 }
 0x152   :  { %v1001_v6 = vmul.f32 %v1175_v3, %v991_v62  ;;  %v1002_v7 = vmul.f32 %v1175_v3, %v992_v63 }
 0x153   :  { %v987_v1 = vmax.f32 %v986_v0, 0.0 }
 0x155   :  { %v1003_v2 = vadd.f32 1e-05, %v987_v1 }
 0x157   :  { %1440 = vrsqrt.f32 %v1003_v2 }
 0x161   :  { %v1441_v8 = vpop.eup %1440 }
 0x162   :  { %v1005_v10 = vmul.f32 %v1441_v8, %v999_v4  ;;  %v1006_v11 = vmul.f32 %v1441_v8, %v1000_v5  ;;  %v1007_v12 = vmul.f32 %v1441_v8, %v1001_v6  ;;  %v1008_v13 = vmul.f32 %v1441_v8, %v1002_v7 }
 0x164   :  { %v1016_v14 = vadd.f32 %v1176_v9, %v1005_v10  ;;  %v1017_v15 = vadd.f32 %v1176_v9, %v1006_v11  ;;  %v1018_v16 = vadd.f32 %v1176_v9, %v1007_v12  ;;  %v1019_v17 = vadd.f32 %v1176_v9, %v1008_v13 }
 0x166   :  { %v1020_v18 = vmin.f32 %v1016_v14, 20.0  ;;  %v1021_v19 = vmin.f32 %v1017_v15, 20.0  ;;  %v1022_v20 = vmin.f32 %v1018_v16, 20.0  ;;  %v1023_v21 = vmin.f32 %v1019_v17, 20.0 }
 0x168   :  { %v1024_v22 = vmul.f32 1.442695, %v1020_v18  ;;  %v1026_v23 = vmul.f32 1.442695, %v1021_v19  ;;  %v1028_v24 = vmul.f32 1.442695, %v1022_v20 }
 0x169   :  { %v1030_v25 = vmul.f32 1.442695, %v1023_v21 }
 0x16a   :  { %1442 = vpow2.f32 %v1024_v22 }
 0x16b   :  { %1444 = vpow2.f32 %v1026_v23 }
 0x16c   :  { %1446 = vpow2.f32 %v1028_v24 }
 0x16d   :  { %1448 = vpow2.f32 %v1030_v25 }
 0x174   :  { %v1443_v26 = vpop.eup %1442 }
 0x175   :  { %v1445_v27 = vpop.eup %1444  ;;  %v1032_v28 = vadd.f32 1.0, %v1443_v26 }
 0x176   :  { %v1447_v29 = vpop.eup %1446  ;;  %v1033_v30 = vadd.f32 1.0, %v1445_v27 }
 0x177   :  { %v1449_v31 = vpop.eup %1448  ;;  %v1034_v32 = vadd.f32 1.0, %v1447_v29  ;;  %v1036_v33 = vmul.f32 %v1032_v28, %v1032_v28 }
 0x178   :  { %v1035_v34 = vadd.f32 1.0, %v1449_v31  ;;  %v1037_v35 = vmul.f32 %v1033_v30, %v1033_v30 }
 0x179   :  { %v1038_v36 = vmul.f32 %v1034_v32, %v1034_v32  ;;  %v1048_v37 = vadd.f32 1.0, %v1036_v33  ;;  %v1177_v42 = vadd.f32 -1.0, %v1036_v33 }
 0x17a   :  { %v1039_v38 = vmul.f32 %v1035_v34, %v1035_v34  ;;  %v1049_v39 = vadd.f32 1.0, %v1037_v35  ;;  %v1178_v43 = vadd.f32 -1.0, %v1037_v35 }
 0x17b   :  { %v1050_v40 = vadd.f32 1.0, %v1038_v36  ;;  %1450 = vrcp.f32 %v1048_v37  ;;  %v1179_v44 = vadd.f32 -1.0, %v1038_v36  ;;  %v1044_v46 = vmul.f32 %v1177_v42, %v1016_v14 }
 0x17c   :  { %v1051_v41 = vadd.f32 1.0, %v1039_v38  ;;  %1452 = vrcp.f32 %v1049_v39  ;;  %v1180_v45 = vadd.f32 -1.0, %v1039_v38  ;;  %v1045_v48 = vmul.f32 %v1178_v43, %v1017_v15 }
 0x17d   :  { %1454 = vrcp.f32 %v1050_v40  ;;  %v1046_v50 = vmul.f32 %v1179_v44, %v1018_v16 }
 0x17e   :  { %1456 = vrcp.f32 %v1051_v41  ;;  %v1047_v53 = vmul.f32 %v1180_v45, %v1019_v17 }
 0x185   :  { %v1451_v47 = vpop.eup %1450 }
 0x186   :  { %v1453_v49 = vpop.eup %1452  ;;  %v1056_v51 = vmul.f32 %v1451_v47, %v1044_v46 }
 0x187   :  { %v1455_v52 = vpop.eup %1454  ;;  %v1057_v54 = vmul.f32 %v1453_v49, %v1045_v48 }
 0x188   :  { %v1457_v55 = vpop.eup %1456  ;;  %v1058_v56 = vmul.f32 %v1455_v52, %v1046_v50 }
 0x189   :  { %v1059_v57 = vmul.f32 %v1457_v55, %v1047_v53  ;;  %v1192_v58 = vpack.c.bf16 %v1057_v54, %v1056_v51 }
 0x18b   :  { %1193 = vst [vmem:[%s1778_s5] sm:$0xff] %v1192_v58   ;;  %v1197_v59 = vpack.c.bf16 %v1059_v57, %v1058_v56 }
 0x18d   :  { %1199 = vst [vmem:[%s1778_s5 + $0x8] sm:$0xff] %v1197_v59  }

// kernel: full_down_and_flatten.9
= control target key start
LH: loop header
LB: loop body
LE: loop exit
PB: predicated region body
PF: predicated region fallthrough
CT: control target
= control target key end

     0   :  { %v218_v1 = vmov 0.0   ;;  %vm219_vm0 = vmmov 0   ;;  %s283_s0 = inlined_call_operand.vmem [shape: bf16[2,128], index: 0, kind: input, shape index: {}]   ;;  %s284_s1 = inlined_call_operand.vmem [shape: bf16[128,128], index: 1, kind: input, shape index: {}]   ;;  %s285_s2 = inlined_call_operand.vmem [shape: f32[1,128], index: 2, kind: input, shape index: {}]   ;;  %s286_s3 = inlined_call_operand.hbm [shape: f32[2,128], index: 3, kind: output, shape index: {}]  }
   0x1   :  { %v186_v0 = vld [vmem:[%s284_s1] sm:$0xff]   ;;  %163 = vmatprep.subr.bf16.mxu0 %v218_v1  ;;  %179 = vmatprep.mubr.msk.bf16.mxu0 %vm219_vm0, %v218_v1  ;;  %v187_v2 = vld [vmem:[%s284_s1 + $0x8] sm:$0xff]  }
   0x2   :  { %164 = vmatpush3.bf16.xpose.msra.mxu0 %v186_v0 }
   0x3   :  { %165 = vmatprep.subr.bf16.mxu0 %v218_v1 }
   0x4   :  { %8 = vsyncpa [#allocation3], 0  ;;  %v188_v3 = vld [vmem:[%s284_s1 + $0x10] sm:$0xff]   ;;  %v189_v4 = vld [vmem:[%s284_s1 + $0x18] sm:$0xff]   ;;  %s220_s5 = smov [#allocation2]  }
   0x5   :  { %v190_v5 = vld [vmem:[%s284_s1 + $0x20] sm:$0xff]   ;;  %v191_v6 = vld [vmem:[%s284_s1 + $0x28] sm:$0xff]   ;;  %v192_v7 = vld [vmem:[%s284_s1 + $0x30] sm:$0xff]   ;;  %s137_s6 = sshll.u32 %s220_s5, 4  ;;  %s138_s6 = int_to_ptr.vmem [resolvable:$true] %s137_s6 }
   0x6   :  { %v193_v8 = vld [vmem:[%s284_s1 + $0x38] sm:$0xff]   ;;  %v16_v9 = vld [vmem:[%s283_s0] sm:$0x1]  ;;  %s194_s1 = scalar_lea.vmem %s138_s6, 32  ;;  %p199_p1 = scmp.lt.s32.totalorder %s138_s6, %s138_s6 }
   0x7   :  { %v153_v11 = vld [vmem:[%s285_s2] ss:$0 sm:$0xff]  ;;  %p195_p0 = scmp.ne.s32.totalorder %s138_s6, %s194_s1  ;;  %p200_p2 = scmp.lt.s32.totalorder %s194_s1, %s194_s1 }
   0x9   :  { %p201_p3 = por %p200_p2, %p199_p1 }
   0xa   :  { %166 = vmatpush3.bf16.xpose.msra.mxu0 %v187_v2 }
   0xb   :  { %167 = vmatprep.subr.bf16.mxu0 %v218_v1  ;;  %p202_p4 = pnand %p201_p3, %p195_p0 }
  0x12   :  { %168 = vmatpush3.bf16.xpose.msra.mxu0 %v188_v3 }
  0x13   :  { %169 = vmatprep.subr.bf16.mxu0 %v218_v1 }
  0x1a   :  { %170 = vmatpush3.bf16.xpose.msra.mxu0 %v189_v4 }
  0x1b   :  { %171 = vmatprep.subr.bf16.mxu0 %v218_v1 }
  0x22   :  { %172 = vmatpush3.bf16.xpose.msra.mxu0 %v190_v5 }
  0x23   :  { %173 = vmatprep.subr.bf16.mxu0 %v218_v1 }
  0x2a   :  { %174 = vmatpush3.bf16.xpose.msra.mxu0 %v191_v6 }
  0x2b   :  { %175 = vmatprep.subr.bf16.mxu0 %v218_v1 }
  0x32   :  { %176 = vmatpush3.bf16.xpose.msra.mxu0 %v192_v7 }
  0x33   :  { %177 = vmatprep.subr.bf16.mxu0 %v218_v1 }
  0x3a   :  { %178 = vmatpush3.bf16.xpose.msra.mxu0 %v193_v8 }
  0x41   :  { %180 = vmatmul.mubr.bf16.vlgmr.msra.gmra.mrb[0].mxu0 %v16_v9 }
 0x114   :  { %v115_v10 = vpop.f32.mrb[0].mxu0 }
 0x115   :  { %v121_v12 = vmul.f32 0.17677669, %v115_v10  ;;  %v181_v13 = vpop.f32.mrb[1].mxu0 }
 0x116   :  { %v118_v14 = vpop.f32.mrb[2].mxu0 }
 0x117   :  { %v182_v15 = vpop.f32.mrb[3].mxu0  ;;  %v129_v16 = vadd.f32 %v153_v11, %v121_v12 }
 0x119   :  { %130 = vst [vmem:[#allocation2] sm:$0x3] %v129_v16 }
 0x11a   :  { %205 = shalt.err (!%p202_p4)
}
 0x11b   :  { %s206_s2 = scalar_lea.hbm %s286_s3, 32 }
 0x11c   :  { %p207_p5 = scmp.ne.s32.totalorder %s286_s3, %s206_s2  ;;  %p210_p6 = scmp.lt.u32.totalorder %s206_s2, %s286_s3 }
 0x11e   :  { %p212_p7 = pnand %p210_p6, %p207_p5 }
 0x120   :  { %215 = shalt.err (!%p212_p7)
}
 0x121   :  { %140 = dma.vmem_to_hbm [thread:$0]  %s138_s6, 32, %s286_s3, [#allocation3]  }
 0x122   :  { %216 = dma.done.wait [#allocation3], 32  }
 0x123   :  { %217 = vsyncadd [#allocation3], 4294967264 }
 0x124   :  { %144 = vsyncpa [#allocation3], 1 }

// kernel: full_down_and_flatten.8
= control target key start
LH: loop header
LB: loop body
LE: loop exit
PB: predicated region body
PF: predicated region fallthrough
CT: control target
= control target key end

     0   :  { %v1213_v21 = vmov 1966171168   ;;  %v180_v23 = vlaneseq  ;;  %vm1215_vm0 = vmmov 0   ;;  %vm880_vm1 = vcmask 1041408   ;;  %s1494_s1 = inlined_call_operand.vmem [shape: bf16[1152,128], index: 1, kind: input, shape index: {}]   ;;  %s1495_s0 = inlined_call_operand.vmem [shape: bf16[2,1152], index: 0, kind: input, shape index: {}]   ;;  %s1496_s2 = inlined_call_operand.vmem [shape: f32[1,128], index: 2, kind: input, shape index: {}]   ;;  %s1497_s3 = inlined_call_operand.vmem [shape: f32[1,128], index: 3, kind: input, shape index: {}]   ;;  %s1498_s4 = inlined_call_operand.vmem [shape: f32[1,128], index: 4, kind: input, shape index: {}]   ;;  %s1499_s5 = inlined_call_operand.vmem [shape: bf16[2,128], index: 5, kind: output, shape index: {}]  }
   0x1   :  { %v1134_v0 = vld [vmem:[%s1494_s1 + $0x40] sm:$0xff]   ;;  %v1138_v4 = vld [vmem:[%s1494_s1 + $0x48] sm:$0xff]   ;;  %v1142_v8 = vld [vmem:[%s1494_s1 + $0x50] sm:$0xff]   ;;  %v178_v22 = vunpack.c.l.s4 %v1213_v21 }
   0x2   :  { %v1135_v1 = vld [vmem:[%s1494_s1] sm:$0xff]   ;;  %1014 = vmatprep.subr.bf16.mxu0 %v1134_v0  ;;  %v1139_v5 = vld [vmem:[%s1494_s1 + $0x8] sm:$0xff]   ;;  %v1143_v9 = vld [vmem:[%s1494_s1 + $0x10] sm:$0xff]   ;;  %v181_v29 = vshrl.u32 %v180_v23, 7 }
   0x3   :  { %v1136_v2 = vld [vmem:[%s1494_s1 + $0xc0] sm:$0xff]   ;;  %1015 = vmatpush3.bf16.msra.mxu0 %v1135_v1  ;;  %v1140_v6 = vld [vmem:[%s1494_s1 + $0xc8] sm:$0xff]   ;;  %v1144_v10 = vld [vmem:[%s1494_s1 + $0xd0] sm:$0xff]   ;;  %v179_v28 = vunpack.c.0.s8 %v178_v22 }
   0x4   :  { %v1137_v3 = vld [vmem:[%s1494_s1 + $0x80] sm:$0xff]   ;;  %1036 = vmatprep.subr.bf16.mxu1 %v1136_v2  ;;  %1016 = vmatprep.subr.bf16.mxu0 %v1138_v4  ;;  %v1141_v7 = vld [vmem:[%s1494_s1 + $0x88] sm:$0xff]   ;;  %v1145_v11 = vld [vmem:[%s1494_s1 + $0x90] sm:$0xff]  }
   0x5   :  { %1037 = vmatpush3.bf16.msra.mxu1 %v1137_v3  ;;  %v1146_v12 = vld [vmem:[%s1494_s1 + $0x58] sm:$0xff]   ;;  %v1150_v16 = vld [vmem:[%s1494_s1 + $0x60] sm:$0xff]   ;;  %v1154_v20 = vld [vmem:[%s1494_s1 + $0x68] sm:$0xff]   ;;  %v1333_v34 = vsub.s32 %v179_v28, %v181_v29 }
   0x6   :  { %1038 = vmatprep.subr.bf16.mxu1 %v1140_v6  ;;  %v1147_v13 = vld [vmem:[%s1494_s1 + $0x18] sm:$0xff]   ;;  %v1151_v17 = vld [vmem:[%s1494_s1 + $0x20] sm:$0xff]   ;;  %v1155_v24 = vld [vmem:[%s1494_s1 + $0x28] sm:$0xff]  }
   0x7   :  { %1017 = vmatpush3.bf16.msra.mxu0 %v1139_v5  ;;  %v1148_v14 = vld [vmem:[%s1494_s1 + $0xd8] sm:$0xff]   ;;  %v1152_v18 = vld [vmem:[%s1494_s1 + $0xe0] sm:$0xff]   ;;  %v1156_v25 = vld [vmem:[%s1494_s1 + $0xe8] sm:$0xff]  }
   0x8   :  { %1018 = vmatprep.subr.bf16.mxu0 %v1142_v8  ;;  %v1149_v15 = vld [vmem:[%s1494_s1 + $0x98] sm:$0xff]   ;;  %v1153_v19 = vld [vmem:[%s1494_s1 + $0xa0] sm:$0xff]   ;;  %v1157_v26 = vld [vmem:[%s1494_s1 + $0xa8] sm:$0xff]  }
   0x9   :  { %1039 = vmatpush3.bf16.msra.mxu1 %v1141_v7  ;;  %v1158_v27 = vld [vmem:[%s1494_s1 + $0x70] sm:$0xff]   ;;  %v1162_v33 = vld [vmem:[%s1494_s1 + $0x78] sm:$0xff]   ;;  %v21_v37 = vld [vmem:[%s1495_s0] sm:$0xff] }
   0xa   :  { %1040 = vmatprep.subr.bf16.mxu1 %v1144_v10  ;;  %v1159_v30 = vld [vmem:[%s1494_s1 + $0x30] sm:$0xff]   ;;  %v1163_v35 = vld [vmem:[%s1494_s1 + $0x38] sm:$0xff]   ;;  %v176_v38 = vcombine.high %v21_v37, %v21_v37  ;;  %v183_v39 = vrot.slane %v21_v37, %v1333_v34  ;;  %v1167_v41 = vld [vmem:[%s1494_s1 + $0x140] sm:$0xff]  }
   0xb   :  { %1019 = vmatpush3.bf16.msra.mxu0 %v1143_v9  ;;  %v1160_v31 = vld [vmem:[%s1494_s1 + $0xf0] sm:$0xff]   ;;  %v1164_v36 = vld [vmem:[%s1494_s1 + $0xf8] sm:$0xff]   ;;  %v1169_v45 = vld [vmem:[%s1494_s1 + $0x1c0] sm:$0xff]  }
   0xc   :  { %1020 = vmatprep.subr.bf16.mxu0 %v1146_v12  ;;  %v1161_v32 = vld [vmem:[%s1494_s1 + $0xb0] sm:$0xff]   ;;  %v1166_v40 = vld [vmem:[%s1494_s1 + $0xb8] sm:$0xff]   ;;  %v191_v42 = vcombine.high %v183_v39, %v183_v39  ;;  %v199_v43 = vrot.slane %v183_v39, %v1333_v34  ;;  %v1353_v44 = vrot.slane %v176_v38, %v1333_v34  ;;  %v1168_v47 = vld [vmem:[%s1494_s1 + $0x100] sm:$0xff]  }
   0xd   :  { %1041 = vmatpush3.bf16.msra.mxu1 %v1145_v11  ;;  %v1171_v50 = vld [vmem:[%s1494_s1 + $0x148] sm:$0xff]   ;;  %v1170_v52 = vld [vmem:[%s1494_s1 + $0x180] sm:$0xff]   ;;  %v1175_v57 = vld [vmem:[%s1494_s1 + $0x150] sm:$0xff]  }
   0xe   :  { %1042 = vmatprep.subr.bf16.mxu1 %v1148_v14  ;;  %v213_v46 = vrot.slane %v191_v42, %v1333_v34  ;;  %v192_v48 = vcombine.high %v1353_v44, %v1353_v44  ;;  %v221_v49 = vcombine.high %v199_v43, %v199_v43  ;;  %v1173_v54 = vld [vmem:[%s1494_s1 + $0x1c8] sm:$0xff]   ;;  %v1177_v59 = vld [vmem:[%s1494_s1 + $0x1d0] sm:$0xff]   ;;  %v1179_v61 = vld [vmem:[%s1494_s1 + $0x158] sm:$0xff]  }
   0xf   :  { %1021 = vmatpush3.bf16.msra.mxu0 %v1147_v13  ;;  %v1172_v55 = vld [vmem:[%s1494_s1 + $0x108] sm:$0xff]   ;;  %v1176_v60 = vld [vmem:[%s1494_s1 + $0x110] sm:$0xff]   ;;  %v1181_v63 = vld [vmem:[%s1494_s1 + $0x1d8] sm:$0xff]  }
  0x10   :  { %1022 = vmatprep.subr.bf16.mxu0 %v1150_v16  ;;  %712 = vmatprep.mubr.bf16.mxu0 %v213_v46  ;;  %v223_v51 = vcombine.high %v213_v46, %v213_v46  ;;  %v220_v53 = vrot.slane %v192_v48, %v1333_v34  ;;  %v1174_v58 = vld [vmem:[%s1494_s1 + $0x188] sm:$0xff]   ;;  %v1178_v62 = vld [vmem:[%s1494_s1 + $0x190] sm:$0xff]   ;;  %v1180_v0 = vld [vmem:[%s1494_s1 + $0x118] sm:$0xff]  }
  0x11   :  { %1043 = vmatpush3.bf16.msra.mxu1 %v1149_v15  ;;  %v1183_v1 = vld [vmem:[%s1494_s1 + $0x160] sm:$0xff]   ;;  %v1182_v2 = vld [vmem:[%s1494_s1 + $0x198] sm:$0xff]   ;;  %v1187_v5 = vld [vmem:[%s1494_s1 + $0x168] sm:$0xff]  }
  0x12   :  { %1044 = vmatprep.subr.bf16.mxu1 %v1152_v18  ;;  %752 = vmatprep.mubr.bf16.mxu1 %v223_v51  ;;  %v224_v56 = vcombine.high %v220_v53, %v220_v53  ;;  %v1185_v3 = vld [vmem:[%s1494_s1 + $0x1e0] sm:$0xff]   ;;  %v1189_v7 = vld [vmem:[%s1494_s1 + $0x1e8] sm:$0xff]   ;;  %v1191_v9 = vld [vmem:[%s1494_s1 + $0x170] sm:$0xff]  }
  0x13   :  { %1023 = vmatpush3.bf16.msra.mxu0 %v1151_v17  ;;  %v1184_v4 = vld [vmem:[%s1494_s1 + $0x120] sm:$0xff]   ;;  %v1188_v8 = vld [vmem:[%s1494_s1 + $0x128] sm:$0xff]   ;;  %v1193_v11 = vld [vmem:[%s1494_s1 + $0x1f0] sm:$0xff]   ;;  %v206_v17 = vrot.slane %v1353_v44, %v1333_v34 }
  0x14   :  { %1024 = vmatprep.subr.bf16.mxu0 %v1154_v20  ;;  %v1186_v6 = vld [vmem:[%s1494_s1 + $0x1a0] sm:$0xff]   ;;  %v1190_v10 = vld [vmem:[%s1494_s1 + $0x1a8] sm:$0xff]   ;;  %v1192_v12 = vld [vmem:[%s1494_s1 + $0x130] sm:$0xff]   ;;  %v1214_v20 = vmov 0.0  }
  0x15   :  { %1045 = vmatpush3.bf16.msra.mxu1 %v1153_v19  ;;  %v1195_v13 = vld [vmem:[%s1494_s1 + $0x178] sm:$0xff]   ;;  %v1194_v14 = vld [vmem:[%s1494_s1 + $0x1b0] sm:$0xff]   ;;  %v1199_v19 = vld [vmem:[%s1494_s1 + $0x200] sm:$0xff]   ;;  %v222_v21 = vcombine.high %v206_v17, %v206_v17 }
  0x16   :  { %1046 = vmatprep.subr.bf16.mxu1 %v1156_v25  ;;  %v1197_v15 = vld [vmem:[%s1494_s1 + $0x1f8] sm:$0xff]   ;;  %v1200_v22 = vld [vmem:[%s1494_s1 + $0x208] sm:$0xff]   ;;  %v1201_v25 = vld [vmem:[%s1494_s1 + $0x210] sm:$0xff]  }
  0x17   :  { %1025 = vmatpush3.bf16.msra.mxu0 %v1155_v24  ;;  %v1196_v16 = vld [vmem:[%s1494_s1 + $0x138] sm:$0xff]   ;;  %v938_v23 = vld.sshfl [vmem:[%s1495_s0 + $0x8] sm:$0x1 pattern:$0x75316420]  ;;  %v1205_v29 = vld [vmem:[%s1494_s1 + $0x230] sm:$0xff]  }
  0x18   :  { %1026 = vmatprep.subr.bf16.mxu0 %v1158_v27  ;;  %v1198_v18 = vld [vmem:[%s1494_s1 + $0x1b8] sm:$0xff]   ;;  %v238_v24 = vrot.slane %v938_v23, %v1333_v34  ;;  %v1203_v27 = vld [vmem:[%s1494_s1 + $0x220] sm:$0xff]   ;;  %v1204_v28 = vld [vmem:[%s1494_s1 + $0x228] sm:$0xff]  }
  0x19   :  { %1047 = vmatpush3.bf16.msra.mxu1 %v1157_v26  ;;  %v1202_v26 = vld [vmem:[%s1494_s1 + $0x218] sm:$0xff]  }
  0x1a   :  { %1048 = vmatprep.subr.bf16.mxu1 %v1160_v31 }
  0x1b   :  { %1027 = vmatpush3.bf16.msra.mxu0 %v1159_v30  ;;  %v1206_v30 = vld [vmem:[%s1494_s1 + $0x238] sm:$0xff]  }
  0x1c   :  { %1028 = vmatprep.subr.bf16.mxu0 %v1162_v33 }
  0x1d   :  { %1049 = vmatpush3.bf16.msra.mxu1 %v1161_v32  ;;  %v937_v32 = vld [vmem:[%s1496_s2] ss:$0 sm:$0xff] }
  0x1e   :  { %1050 = vmatprep.subr.bf16.mxu1 %v1164_v36 }
  0x1f   :  { %1029 = vmatpush3.bf16.msra.mxu0 %v1163_v35 }
  0x20   :  { %1058 = vmatprep.subr.bf16.mxu0 %v1167_v41 }
  0x21   :  { %1051 = vmatpush3.bf16.msra.mxu1 %v1166_v40 }
  0x22   :  { %1080 = vmatprep.subr.bf16.mxu1 %v1169_v45  ;;  %713 = vmatmul.mubr.bf16.vlgmr.msra.gmra.mrb[0].mxu0 %v199_v43 }
  0x23   :  { %1059 = vmatpush3.bf16.msra.mxu0 %v1168_v47  ;;  %792 = vmatprep.mubr.bf16.mxu0 %v220_v53 }
  0x24   :  { %753 = vmatmul.mubr.bf16.vlgmr.msra.gmra.mrb[0].mxu1 %v221_v49  ;;  %1060 = vmatprep.subr.bf16.mxu0 %v1171_v50 }
  0x25   :  { %1081 = vmatpush3.bf16.msra.mxu1 %v1170_v52  ;;  %832 = vmatprep.mubr.bf16.mxu1 %v224_v56 }
  0x26   :  { %1082 = vmatprep.subr.bf16.mxu1 %v1173_v54 }
  0x27   :  { %1061 = vmatpush3.bf16.msra.mxu0 %v1172_v55 }
  0x28   :  { %1062 = vmatprep.subr.bf16.mxu0 %v1175_v57 }
  0x29   :  { %1083 = vmatpush3.bf16.msra.mxu1 %v1174_v58 }
  0x2a   :  { %1084 = vmatprep.subr.bf16.mxu1 %v1177_v59 }
  0x2b   :  { %1063 = vmatpush3.bf16.msra.mxu0 %v1176_v60 }
  0x2c   :  { %1064 = vmatprep.subr.bf16.mxu0 %v1179_v61 }
  0x2d   :  { %1085 = vmatpush3.bf16.msra.mxu1 %v1178_v62 }
  0x2e   :  { %1086 = vmatprep.subr.bf16.mxu1 %v1181_v63 }
  0x2f   :  { %1065 = vmatpush3.bf16.msra.mxu0 %v1180_v0 }
  0x30   :  { %1066 = vmatprep.subr.bf16.mxu0 %v1183_v1 }
  0x31   :  { %1087 = vmatpush3.bf16.msra.mxu1 %v1182_v2 }
  0x32   :  { %1088 = vmatprep.subr.bf16.mxu1 %v1185_v3 }
  0x33   :  { %1067 = vmatpush3.bf16.msra.mxu0 %v1184_v4 }
  0x34   :  { %1068 = vmatprep.subr.bf16.mxu0 %v1187_v5 }
  0x35   :  { %1089 = vmatpush3.bf16.msra.mxu1 %v1186_v6 }
  0x36   :  { %1090 = vmatprep.subr.bf16.mxu1 %v1189_v7 }
  0x37   :  { %1069 = vmatpush3.bf16.msra.mxu0 %v1188_v8 }
  0x38   :  { %1070 = vmatprep.subr.bf16.mxu0 %v1191_v9 }
  0x39   :  { %1091 = vmatpush3.bf16.msra.mxu1 %v1190_v10 }
  0x3a   :  { %1092 = vmatprep.subr.bf16.mxu1 %v1193_v11 }
  0x3b   :  { %1071 = vmatpush3.bf16.msra.mxu0 %v1192_v12 }
  0x3c   :  { %1072 = vmatprep.subr.bf16.mxu0 %v1195_v13 }
  0x3d   :  { %1093 = vmatpush3.bf16.msra.mxu1 %v1194_v14 }
  0x3e   :  { %1094 = vmatprep.subr.bf16.mxu1 %v1197_v15 }
  0x3f   :  { %1073 = vmatpush3.bf16.msra.mxu0 %v1196_v16 }
  0x40   :  { %1111 = vmatprep.subr.bf16.mxu0 %v1214_v20 }
  0x41   :  { %1095 = vmatpush3.bf16.msra.mxu1 %v1198_v18 }
  0x42   :  { %793 = vmatmul.mubr.bf16.vlgmr.msra.gmra.mrb[4].mxu0 %v206_v17 }
  0x43   :  { %1112 = vmatpush3.bf16.msra.mxu0 %v1199_v19  ;;  %1127 = vmatprep.mubr.msk.bf16.mxu0 %vm1215_vm0, %v1214_v20  ;;  %v1011_v19 = vld [vmem:[%s1497_s3] ss:$0 sm:$0xff] }
  0x44   :  { %833 = vmatmul.mubr.bf16.vlgmr.msra.gmra.mrb[4].mxu1 %v222_v21  ;;  %1113 = vmatprep.subr.bf16.mxu0 %v1214_v20 }
  0x47   :  { %1114 = vmatpush3.bf16.msra.mxu0 %v1200_v22  ;;  %v1012_v22 = vld [vmem:[%s1498_s4] ss:$0 sm:$0xff] }
  0x48   :  { %1115 = vmatprep.subr.bf16.mxu0 %v1214_v20 }
  0x4b   :  { %1116 = vmatpush3.bf16.msra.mxu0 %v1201_v25 }
  0x4c   :  { %1117 = vmatprep.subr.bf16.mxu0 %v1214_v20 }
  0x4f   :  { %1118 = vmatpush3.bf16.msra.mxu0 %v1202_v26 }
  0x50   :  { %1119 = vmatprep.subr.bf16.mxu0 %v1214_v20 }
  0x53   :  { %1120 = vmatpush3.bf16.msra.mxu0 %v1203_v27 }
  0x54   :  { %1121 = vmatprep.subr.bf16.mxu0 %v1214_v20 }
  0x57   :  { %1122 = vmatpush3.bf16.msra.mxu0 %v1204_v28 }
  0x58   :  { %1123 = vmatprep.subr.bf16.mxu0 %v1214_v20 }
  0x5b   :  { %1124 = vmatpush3.bf16.msra.mxu0 %v1205_v29 }
  0x5c   :  { %1125 = vmatprep.subr.bf16.mxu0 %v1214_v20 }
  0x5f   :  { %1126 = vmatpush3.bf16.msra.mxu0 %v1206_v30 }
  0x62   :  { %1128 = vmatmul.mubr.bf16.vlgmr.msra.gmra.mrb[8].mxu0 %v238_v24 }
  0xf5   :  { %v1030_v31 = vpop.f32.mrb[0].mxu0 }
  0xf6   :  { %v1031_v33 = vpop.f32.mrb[1].mxu0 }
  0xf7   :  { %v1032_v34 = vadd.f32 %v1031_v33, %v1030_v31  ;;  %v1033_v35 = vpop.f32.mrb[2].mxu0  ;;  %v1052_v36 = vpop.f32.mrb[0].mxu1 }
  0xf8   :  { %v1034_v37 = vpop.f32.mrb[3].mxu0  ;;  %v1053_v38 = vpop.f32.mrb[1].mxu1 }
  0xf9   :  { %v715_v39 = vadd.f32 %v1032_v34, %v937_v32  ;;  %v1054_v40 = vadd.f32 %v1053_v38, %v1052_v36  ;;  %v1055_v41 = vpop.f32.mrb[2].mxu1 }
  0xfa   :  { %v1056_v42 = vpop.f32.mrb[3].mxu1 }
  0xfb   :  { %v755_v43 = vadd.f32 %v1054_v40, %v715_v39 }
 0x115   :  { %v1074_v44 = vpop.f32.mrb[4].mxu0 }
 0x116   :  { %v1075_v45 = vpop.f32.mrb[5].mxu0 }
 0x117   :  { %v1076_v46 = vadd.f32 %v1075_v45, %v1074_v44  ;;  %v1077_v47 = vpop.f32.mrb[6].mxu0  ;;  %v1096_v48 = vpop.f32.mrb[4].mxu1 }
 0x118   :  { %v1078_v49 = vpop.f32.mrb[7].mxu0  ;;  %v1097_v50 = vpop.f32.mrb[5].mxu1 }
 0x119   :  { %v795_v51 = vadd.f32 %v1076_v46, %v755_v43  ;;  %v1098_v52 = vadd.f32 %v1097_v50, %v1096_v48  ;;  %v1099_v53 = vpop.f32.mrb[6].mxu1 }
 0x11a   :  { %v1100_v54 = vpop.f32.mrb[7].mxu1 }
 0x11b   :  { %v835_v55 = vadd.f32 %v1098_v52, %v795_v51 }
 0x135   :  { %v874_v56 = vpop.f32.mrb[8].mxu0 }
 0x136   :  { %v875_v57 = vadd.f32 %v874_v56, %v835_v55  ;;  %v1129_v58 = vpop.f32.mrb[9].mxu0 }
 0x137   :  { %v877_v59 = vpop.f32.mrb[10].mxu0 }
 0x138   :  { %v881_v60 = vsel %vm880_vm1, %v875_v57, 0.0  ;;  %v889_v61 = vmul.f32 %v875_v57, %v875_v57  ;;  %v1130_v62 = vpop.f32.mrb[11].mxu0 }
 0x139   :  { %v882_v63 = vrot.slane %v881_v60, 4 }
 0x13a   :  { %v890_v0 = vsel %vm880_vm1, %v889_v61, 0.0 }
 0x13b   :  { %v883_v1 = vadd.f32 %v882_v63, %v881_v60  ;;  %v891_v2 = vrot.slane %v890_v0, 4 }
 0x13d   :  { %v884_v3 = vrot.slane %v883_v1, 2  ;;  %v892_v4 = vadd.f32 %v891_v2, %v890_v0 }
 0x13f   :  { %v885_v5 = vadd.f32 %v884_v3, %v883_v1  ;;  %v893_v6 = vrot.slane %v892_v4, 2 }
 0x141   :  { %v886_v7 = vrot.slane %v885_v5, 1  ;;  %v894_v8 = vadd.f32 %v893_v6, %v892_v4 }
 0x143   :  { %v887_v9 = vadd.f32 %v886_v7, %v885_v5  ;;  %v895_v10 = vrot.slane %v894_v8, 1 }
 0x145   :  { %v888_v11 = vmul.f32 0.5, %v887_v9  ;;  %v896_v12 = vadd.f32 %v895_v10, %v894_v8 }
 0x147   :  { %v897_v13 = vmul.f32 0.5, %v896_v12  ;;  %v898_v14 = vmul.f32 %v888_v11, %v888_v11  ;;  %v902_v18 = vsub.f32 %v875_v57, %v888_v11 }
 0x149   :  { %v899_v15 = vsub.f32 %v897_v13, %v898_v14  ;;  %v909_v20 = vmul.f32 %v1011_v19, %v902_v18 }
 0x14b   :  { %v900_v16 = vmax.f32 %v899_v15, 0.0 }
 0x14d   :  { %v910_v17 = vadd.f32 1e-05, %v900_v16 }
 0x14f   :  { %1207 = vrsqrt.f32 %v910_v17 }
 0x159   :  { %v1208_v21 = vpop.eup %1207 }
 0x15a   :  { %v912_v23 = vmul.f32 %v1208_v21, %v909_v20 }
 0x15c   :  { %v920_v24 = vadd.f32 %v1012_v22, %v912_v23 }
 0x15e   :  { %v921_v25 = vmin.f32 %v920_v24, 20.0 }
 0x160   :  { %v922_v26 = vmul.f32 1.442695, %v921_v25 }
 0x162   :  { %1209 = vpow2.f32 %v922_v26 }
 0x16c   :  { %v1210_v27 = vpop.eup %1209 }
 0x16d   :  { %v924_v28 = vadd.f32 1.0, %v1210_v27 }
 0x16f   :  { %v925_v29 = vmul.f32 %v924_v28, %v924_v28 }
 0x171   :  { %v928_v30 = vadd.f32 1.0, %v925_v29  ;;  %v1013_v31 = vadd.f32 -1.0, %v925_v29 }
 0x173   :  { %1211 = vrcp.f32 %v928_v30  ;;  %v927_v32 = vmul.f32 %v1013_v31, %v920_v24 }
 0x17d   :  { %v1212_v33 = vpop.eup %1211 }
 0x17e   :  { %v930_v34 = vmul.f32 %v1212_v33, %v927_v32 }
 0x180   :  { %v931_v35 = vpack.c.bf16 %v930_v34, %v930_v34 }
 0x182   :  { %932 = vst [vmem:[%s1499_s5] sm:$0x1] %v931_v35 }

// kernel: full_down_and_flatten.7
= control target key start
LH: loop header
LB: loop body
LE: loop exit
PB: predicated region body
PF: predicated region fallthrough
CT: control target
= control target key end

     0   :  { %vm1187_vm0 = vmmov 0   ;;  %s1461_s1 = inlined_call_operand.vmem [shape: bf16[1152,128], index: 1, kind: input, shape index: {}]   ;;  %s1462_s0 = inlined_call_operand.vmem [shape: bf16[8,1152], index: 0, kind: input, shape index: {}]   ;;  %s1463_s2 = inlined_call_operand.vmem [shape: f32[1,128], index: 2, kind: input, shape index: {}]   ;;  %s1464_s3 = inlined_call_operand.vmem [shape: f32[1,128], index: 3, kind: input, shape index: {}]   ;;  %s1465_s4 = inlined_call_operand.vmem [shape: f32[1,128], index: 4, kind: input, shape index: {}]   ;;  %s1466_s5 = inlined_call_operand.vmem [shape: bf16[8,128], index: 5, kind: output, shape index: {}]  }
   0x1   :  { %v1099_v0 = vld [vmem:[%s1461_s1 + $0x40] sm:$0xff]   ;;  %v1103_v4 = vld [vmem:[%s1461_s1 + $0x48] sm:$0xff]   ;;  %v1107_v8 = vld [vmem:[%s1461_s1 + $0x50] sm:$0xff]  }
   0x2   :  { %v1100_v1 = vld [vmem:[%s1461_s1] sm:$0xff]   ;;  %980 = vmatprep.subr.bf16.mxu0 %v1099_v0  ;;  %v1104_v5 = vld [vmem:[%s1461_s1 + $0x8] sm:$0xff]   ;;  %v1108_v9 = vld [vmem:[%s1461_s1 + $0x10] sm:$0xff]  }
   0x3   :  { %v1101_v2 = vld [vmem:[%s1461_s1 + $0xc0] sm:$0xff]   ;;  %981 = vmatpush3.bf16.msra.mxu0 %v1100_v1  ;;  %v1105_v6 = vld [vmem:[%s1461_s1 + $0xc8] sm:$0xff]   ;;  %v1109_v10 = vld [vmem:[%s1461_s1 + $0xd0] sm:$0xff]  }
   0x4   :  { %v1102_v3 = vld [vmem:[%s1461_s1 + $0x80] sm:$0xff]   ;;  %1002 = vmatprep.subr.bf16.mxu1 %v1101_v2  ;;  %982 = vmatprep.subr.bf16.mxu0 %v1103_v4  ;;  %v1106_v7 = vld [vmem:[%s1461_s1 + $0x88] sm:$0xff]   ;;  %v1110_v11 = vld [vmem:[%s1461_s1 + $0x90] sm:$0xff]  }
   0x5   :  { %1003 = vmatpush3.bf16.msra.mxu1 %v1102_v3  ;;  %v1111_v12 = vld [vmem:[%s1461_s1 + $0x58] sm:$0xff]   ;;  %v1115_v16 = vld [vmem:[%s1461_s1 + $0x60] sm:$0xff]   ;;  %v1119_v20 = vld [vmem:[%s1461_s1 + $0x68] sm:$0xff]  }
   0x6   :  { %1004 = vmatprep.subr.bf16.mxu1 %v1105_v6  ;;  %v1112_v13 = vld [vmem:[%s1461_s1 + $0x18] sm:$0xff]   ;;  %v1116_v17 = vld [vmem:[%s1461_s1 + $0x20] sm:$0xff]   ;;  %v1120_v21 = vld [vmem:[%s1461_s1 + $0x28] sm:$0xff]  }
   0x7   :  { %983 = vmatpush3.bf16.msra.mxu0 %v1104_v5  ;;  %v1113_v14 = vld [vmem:[%s1461_s1 + $0xd8] sm:$0xff]   ;;  %v1117_v18 = vld [vmem:[%s1461_s1 + $0xe0] sm:$0xff]   ;;  %v1121_v22 = vld [vmem:[%s1461_s1 + $0xe8] sm:$0xff]  }
   0x8   :  { %984 = vmatprep.subr.bf16.mxu0 %v1107_v8  ;;  %v1114_v15 = vld [vmem:[%s1461_s1 + $0x98] sm:$0xff]   ;;  %v1118_v19 = vld [vmem:[%s1461_s1 + $0xa0] sm:$0xff]   ;;  %v1122_v23 = vld [vmem:[%s1461_s1 + $0xa8] sm:$0xff]  }
   0x9   :  { %1005 = vmatpush3.bf16.msra.mxu1 %v1106_v7  ;;  %v1123_v24 = vld [vmem:[%s1461_s1 + $0x70] sm:$0xff]   ;;  %v1127_v28 = vld [vmem:[%s1461_s1 + $0x78] sm:$0xff]   ;;  %v21_v31 = vld [vmem:[%s1462_s0] sm:$0xff] }
   0xa   :  { %1006 = vmatprep.subr.bf16.mxu1 %v1109_v10  ;;  %v1124_v25 = vld [vmem:[%s1461_s1 + $0x30] sm:$0xff]   ;;  %v1128_v29 = vld [vmem:[%s1461_s1 + $0x38] sm:$0xff]   ;;  %v896_v32 = vcombine.low %v21_v31, %v21_v31  ;;  %v897_v33 = vcombine.high %v21_v31, %v21_v31  ;;  %v1133_v35 = vld [vmem:[%s1461_s1 + $0x140] sm:$0xff]  }
   0xb   :  { %985 = vmatpush3.bf16.msra.mxu0 %v1108_v9  ;;  %v1125_v26 = vld [vmem:[%s1461_s1 + $0xf0] sm:$0xff]   ;;  %v1129_v30 = vld [vmem:[%s1461_s1 + $0xf8] sm:$0xff]   ;;  %v22_v36 = vld [vmem:[%s1462_s0 + $0x8] sm:$0xff]  ;;  %v1186_v9 = vmov 0.0  }
   0xc   :  { %986 = vmatprep.subr.bf16.mxu0 %v1111_v12  ;;  %v1126_v27 = vld [vmem:[%s1461_s1 + $0xb0] sm:$0xff]   ;;  %v1132_v34 = vld [vmem:[%s1461_s1 + $0xb8] sm:$0xff]   ;;  %673 = vmatprep.mubr.bf16.mxu0 %v897_v33  ;;  %v898_v37 = vcombine.low %v22_v36, %v22_v36  ;;  %v899_v38 = vcombine.high %v22_v36, %v22_v36  ;;  %v1136_v39 = vld [vmem:[%s1461_s1 + $0x100] sm:$0xff]  }
   0xd   :  { %1007 = vmatpush3.bf16.msra.mxu1 %v1110_v11  ;;  %v1137_v40 = vld [vmem:[%s1461_s1 + $0x1c0] sm:$0xff]   ;;  %v1139_v42 = vld [vmem:[%s1461_s1 + $0x148] sm:$0xff]   ;;  %v1143_v46 = vld [vmem:[%s1461_s1 + $0x150] sm:$0xff]  }
   0xe   :  { %1008 = vmatprep.subr.bf16.mxu1 %v1113_v14  ;;  %713 = vmatprep.mubr.bf16.mxu1 %v899_v38  ;;  %v1138_v41 = vld [vmem:[%s1461_s1 + $0x180] sm:$0xff]   ;;  %v1140_v43 = vld [vmem:[%s1461_s1 + $0x108] sm:$0xff]   ;;  %v1144_v47 = vld [vmem:[%s1461_s1 + $0x110] sm:$0xff]  }
   0xf   :  { %987 = vmatpush3.bf16.msra.mxu0 %v1112_v13  ;;  %v1141_v44 = vld [vmem:[%s1461_s1 + $0x1c8] sm:$0xff]   ;;  %v1145_v48 = vld [vmem:[%s1461_s1 + $0x1d0] sm:$0xff]   ;;  %v1147_v50 = vld [vmem:[%s1461_s1 + $0x158] sm:$0xff]  }
  0x10   :  { %988 = vmatprep.subr.bf16.mxu0 %v1115_v16  ;;  %v1142_v45 = vld [vmem:[%s1461_s1 + $0x188] sm:$0xff]   ;;  %v1146_v49 = vld [vmem:[%s1461_s1 + $0x190] sm:$0xff]   ;;  %v1148_v51 = vld [vmem:[%s1461_s1 + $0x118] sm:$0xff]  }
  0x11   :  { %1009 = vmatpush3.bf16.msra.mxu1 %v1114_v15  ;;  %v1149_v52 = vld [vmem:[%s1461_s1 + $0x1d8] sm:$0xff]   ;;  %v1151_v54 = vld [vmem:[%s1461_s1 + $0x160] sm:$0xff]   ;;  %v1155_v58 = vld [vmem:[%s1461_s1 + $0x168] sm:$0xff]  }
  0x12   :  { %1010 = vmatprep.subr.bf16.mxu1 %v1117_v18  ;;  %v1150_v53 = vld [vmem:[%s1461_s1 + $0x198] sm:$0xff]   ;;  %v1152_v55 = vld [vmem:[%s1461_s1 + $0x120] sm:$0xff]   ;;  %v1156_v59 = vld [vmem:[%s1461_s1 + $0x128] sm:$0xff]  }
  0x13   :  { %989 = vmatpush3.bf16.msra.mxu0 %v1116_v17  ;;  %v1153_v56 = vld [vmem:[%s1461_s1 + $0x1e0] sm:$0xff]   ;;  %v1157_v60 = vld [vmem:[%s1461_s1 + $0x1e8] sm:$0xff]   ;;  %v1159_v62 = vld [vmem:[%s1461_s1 + $0x170] sm:$0xff]  }
  0x14   :  { %990 = vmatprep.subr.bf16.mxu0 %v1119_v20  ;;  %v1154_v57 = vld [vmem:[%s1461_s1 + $0x1a0] sm:$0xff]   ;;  %v1158_v61 = vld [vmem:[%s1461_s1 + $0x1a8] sm:$0xff]   ;;  %v1160_v63 = vld [vmem:[%s1461_s1 + $0x130] sm:$0xff]  }
  0x15   :  { %1011 = vmatpush3.bf16.msra.mxu1 %v1118_v19  ;;  %v1161_v0 = vld [vmem:[%s1461_s1 + $0x1f0] sm:$0xff]   ;;  %v1163_v2 = vld [vmem:[%s1461_s1 + $0x178] sm:$0xff]   ;;  %v1171_v13 = vld [vmem:[%s1461_s1 + $0x200] sm:$0xff]  }
  0x16   :  { %1012 = vmatprep.subr.bf16.mxu1 %v1121_v22  ;;  %v1162_v1 = vld [vmem:[%s1461_s1 + $0x1b0] sm:$0xff]   ;;  %v1164_v3 = vld [vmem:[%s1461_s1 + $0x138] sm:$0xff]   ;;  %v1172_v14 = vld [vmem:[%s1461_s1 + $0x208] sm:$0xff]  }
  0x17   :  { %991 = vmatpush3.bf16.msra.mxu0 %v1120_v21  ;;  %v1165_v4 = vld [vmem:[%s1461_s1 + $0x1f8] sm:$0xff]   ;;  %v23_v5 = vld [vmem:[%s1462_s0 + $0x10] sm:$0xff]  ;;  %v1175_v17 = vld [vmem:[%s1461_s1 + $0x220] sm:$0xff]  }
  0x18   :  { %992 = vmatprep.subr.bf16.mxu0 %v1123_v24  ;;  %v900_v6 = vcombine.low %v23_v5, %v23_v5  ;;  %v901_v7 = vcombine.high %v23_v5, %v23_v5  ;;  %v1168_v8 = vld [vmem:[%s1461_s1 + $0x1b8] sm:$0xff]   ;;  %v1173_v15 = vld [vmem:[%s1461_s1 + $0x210] sm:$0xff]   ;;  %v1176_v18 = vld [vmem:[%s1461_s1 + $0x228] sm:$0xff]  }
  0x19   :  { %1013 = vmatpush3.bf16.msra.mxu1 %v1122_v23  ;;  %v24_v10 = vld [vmem:[%s1462_s0 + $0x18] sm:$0xff]  ;;  %v1177_v19 = vld [vmem:[%s1461_s1 + $0x230] sm:$0xff]   ;;  %v1179_v21 = vld [vmem:[%s1462_s0 + $0x20] ss:$0 sps:$4 sm:$0xff]  }
  0x1a   :  { %1014 = vmatprep.subr.bf16.mxu1 %v1125_v26  ;;  %v902_v11 = vcombine.low %v24_v10, %v24_v10  ;;  %v903_v12 = vcombine.high %v24_v10, %v24_v10  ;;  %v1174_v16 = vld [vmem:[%s1461_s1 + $0x218] sm:$0xff]   ;;  %v895_v23 = vld [vmem:[%s1463_s2] ss:$0 sm:$0xff] }
  0x1b   :  { %993 = vmatpush3.bf16.msra.mxu0 %v1124_v25  ;;  %v1178_v20 = vld [vmem:[%s1461_s1 + $0x238] sm:$0xff]  }
  0x1c   :  { %994 = vmatprep.subr.bf16.mxu0 %v1127_v28 }
  0x1d   :  { %1015 = vmatpush3.bf16.msra.mxu1 %v1126_v27 }
  0x1e   :  { %1016 = vmatprep.subr.bf16.mxu1 %v1129_v30 }
  0x1f   :  { %995 = vmatpush3.bf16.msra.mxu0 %v1128_v29 }
  0x20   :  { %1024 = vmatprep.subr.bf16.mxu0 %v1133_v35 }
  0x21   :  { %1017 = vmatpush3.bf16.msra.mxu1 %v1132_v34 }
  0x22   :  { %674 = vmatmul.mubr.bf16.vlgmr.msra.gmra.mrb[0].mxu0 %v896_v32  ;;  %1046 = vmatprep.subr.bf16.mxu1 %v1137_v40 }
  0x23   :  { %1025 = vmatpush3.bf16.msra.mxu0 %v1136_v39  ;;  %753 = vmatprep.mubr.bf16.mxu0 %v901_v7 }
  0x24   :  { %714 = vmatmul.mubr.bf16.vlgmr.msra.gmra.mrb[0].mxu1 %v898_v37  ;;  %1026 = vmatprep.subr.bf16.mxu0 %v1139_v42 }
  0x25   :  { %1047 = vmatpush3.bf16.msra.mxu1 %v1138_v41  ;;  %793 = vmatprep.mubr.bf16.mxu1 %v903_v12 }
  0x26   :  { %1048 = vmatprep.subr.bf16.mxu1 %v1141_v44 }
  0x27   :  { %1027 = vmatpush3.bf16.msra.mxu0 %v1140_v43 }
  0x28   :  { %1028 = vmatprep.subr.bf16.mxu0 %v1143_v46 }
  0x29   :  { %1049 = vmatpush3.bf16.msra.mxu1 %v1142_v45 }
  0x2a   :  { %1050 = vmatprep.subr.bf16.mxu1 %v1145_v48 }
  0x2b   :  { %1029 = vmatpush3.bf16.msra.mxu0 %v1144_v47 }
  0x2c   :  { %1030 = vmatprep.subr.bf16.mxu0 %v1147_v50 }
  0x2d   :  { %1051 = vmatpush3.bf16.msra.mxu1 %v1146_v49 }
  0x2e   :  { %1052 = vmatprep.subr.bf16.mxu1 %v1149_v52 }
  0x2f   :  { %1031 = vmatpush3.bf16.msra.mxu0 %v1148_v51 }
  0x30   :  { %1032 = vmatprep.subr.bf16.mxu0 %v1151_v54 }
  0x31   :  { %1053 = vmatpush3.bf16.msra.mxu1 %v1150_v53 }
  0x32   :  { %1054 = vmatprep.subr.bf16.mxu1 %v1153_v56 }
  0x33   :  { %1033 = vmatpush3.bf16.msra.mxu0 %v1152_v55 }
  0x34   :  { %1034 = vmatprep.subr.bf16.mxu0 %v1155_v58 }
  0x35   :  { %1055 = vmatpush3.bf16.msra.mxu1 %v1154_v57 }
  0x36   :  { %1056 = vmatprep.subr.bf16.mxu1 %v1157_v60 }
  0x37   :  { %1035 = vmatpush3.bf16.msra.mxu0 %v1156_v59 }
  0x38   :  { %1036 = vmatprep.subr.bf16.mxu0 %v1159_v62 }
  0x39   :  { %1057 = vmatpush3.bf16.msra.mxu1 %v1158_v61 }
  0x3a   :  { %1058 = vmatprep.subr.bf16.mxu1 %v1161_v0 }
  0x3b   :  { %1037 = vmatpush3.bf16.msra.mxu0 %v1160_v63 }
  0x3c   :  { %1038 = vmatprep.subr.bf16.mxu0 %v1163_v2 }
  0x3d   :  { %1059 = vmatpush3.bf16.msra.mxu1 %v1162_v1 }
  0x3e   :  { %1060 = vmatprep.subr.bf16.mxu1 %v1165_v4 }
  0x3f   :  { %1039 = vmatpush3.bf16.msra.mxu0 %v1164_v3 }
  0x40   :  { %1077 = vmatprep.subr.bf16.mxu0 %v1186_v9 }
  0x41   :  { %1061 = vmatpush3.bf16.msra.mxu1 %v1168_v8  ;;  %v977_v8 = vld [vmem:[%s1464_s3] ss:$0 sm:$0xff] }
  0x42   :  { %754 = vmatmul.mubr.bf16.vlgmr.msra.gmra.mrb[4].mxu0 %v900_v6 }
  0x43   :  { %1078 = vmatpush3.bf16.msra.mxu0 %v1171_v13  ;;  %1093 = vmatprep.mubr.msk.bf16.mxu0 %vm1187_vm0, %v1186_v9 }
  0x44   :  { %794 = vmatmul.mubr.bf16.vlgmr.msra.gmra.mrb[4].mxu1 %v902_v11  ;;  %1079 = vmatprep.subr.bf16.mxu0 %v1186_v9  ;;  %v978_v11 = vld [vmem:[%s1465_s4] ss:$0 sm:$0xff] }
  0x47   :  { %1080 = vmatpush3.bf16.msra.mxu0 %v1172_v14 }
  0x48   :  { %1081 = vmatprep.subr.bf16.mxu0 %v1186_v9 }
  0x4b   :  { %1082 = vmatpush3.bf16.msra.mxu0 %v1173_v15 }
  0x4c   :  { %1083 = vmatprep.subr.bf16.mxu0 %v1186_v9 }
  0x4f   :  { %1084 = vmatpush3.bf16.msra.mxu0 %v1174_v16 }
  0x50   :  { %1085 = vmatprep.subr.bf16.mxu0 %v1186_v9 }
  0x53   :  { %1086 = vmatpush3.bf16.msra.mxu0 %v1175_v17 }
  0x54   :  { %1087 = vmatprep.subr.bf16.mxu0 %v1186_v9 }
  0x57   :  { %1088 = vmatpush3.bf16.msra.mxu0 %v1176_v18 }
  0x58   :  { %1089 = vmatprep.subr.bf16.mxu0 %v1186_v9 }
  0x5b   :  { %1090 = vmatpush3.bf16.msra.mxu0 %v1177_v19 }
  0x5c   :  { %1091 = vmatprep.subr.bf16.mxu0 %v1186_v9 }
  0x5f   :  { %1092 = vmatpush3.bf16.msra.mxu0 %v1178_v20 }
  0x62   :  { %1094 = vmatmul.mubr.bf16.vlgmr.msra.gmra.mrb[8].mxu0 %v1179_v21 }
  0xf5   :  { %v996_v22 = vpop.f32.mrb[0].mxu0 }
  0xf6   :  { %v997_v24 = vpop.f32.mrb[1].mxu0 }
  0xf7   :  { %v998_v25 = vadd.f32 %v997_v24, %v996_v22  ;;  %v999_v26 = vpop.f32.mrb[2].mxu0  ;;  %v1018_v27 = vpop.f32.mrb[0].mxu1 }
  0xf8   :  { %v1000_v28 = vpop.f32.mrb[3].mxu0  ;;  %v1019_v29 = vpop.f32.mrb[1].mxu1 }
  0xf9   :  { %v676_v30 = vadd.f32 %v998_v25, %v895_v23  ;;  %v1020_v31 = vadd.f32 %v1019_v29, %v1018_v27  ;;  %v1021_v32 = vpop.f32.mrb[2].mxu1 }
  0xfa   :  { %v1022_v33 = vpop.f32.mrb[3].mxu1 }
  0xfb   :  { %v716_v34 = vadd.f32 %v1020_v31, %v676_v30 }
 0x115   :  { %v1040_v35 = vpop.f32.mrb[4].mxu0 }
 0x116   :  { %v1041_v36 = vpop.f32.mrb[5].mxu0 }
 0x117   :  { %v1042_v37 = vadd.f32 %v1041_v36, %v1040_v35  ;;  %v1043_v38 = vpop.f32.mrb[6].mxu0  ;;  %v1062_v39 = vpop.f32.mrb[4].mxu1 }
 0x118   :  { %v1044_v40 = vpop.f32.mrb[7].mxu0  ;;  %v1063_v41 = vpop.f32.mrb[5].mxu1 }
 0x119   :  { %v756_v42 = vadd.f32 %v1042_v37, %v716_v34  ;;  %v1064_v43 = vadd.f32 %v1063_v41, %v1062_v39  ;;  %v1065_v44 = vpop.f32.mrb[6].mxu1 }
 0x11a   :  { %v1066_v45 = vpop.f32.mrb[7].mxu1 }
 0x11b   :  { %v796_v46 = vadd.f32 %v1064_v43, %v756_v42 }
 0x135   :  { %v835_v47 = vpop.f32.mrb[8].mxu0 }
 0x136   :  { %v836_v48 = vadd.f32 %v835_v47, %v796_v46  ;;  %v1095_v49 = vpop.f32.mrb[9].mxu0 }
 0x137   :  { %v838_v50 = vpop.f32.mrb[10].mxu0 }
 0x138   :  { %v841_v51 = vrot.slane %v836_v48, 4  ;;  %v848_v52 = vmul.f32 %v836_v48, %v836_v48  ;;  %v1096_v53 = vpop.f32.mrb[11].mxu0 }
 0x13a   :  { %v842_v54 = vadd.f32 %v841_v51, %v836_v48  ;;  %v849_v55 = vrot.slane %v848_v52, 4 }
 0x13c   :  { %v843_v56 = vrot.slane %v842_v54, 2  ;;  %v850_v57 = vadd.f32 %v849_v55, %v848_v52 }
 0x13e   :  { %v844_v58 = vadd.f32 %v843_v56, %v842_v54  ;;  %v851_v59 = vrot.slane %v850_v57, 2 }
 0x140   :  { %v845_v60 = vrot.slane %v844_v58, 1  ;;  %v852_v61 = vadd.f32 %v851_v59, %v850_v57 }
 0x142   :  { %v846_v62 = vadd.f32 %v845_v60, %v844_v58  ;;  %v853_v63 = vrot.slane %v852_v61, 1 }
 0x144   :  { %v847_v0 = vmul.f32 0.125, %v846_v62  ;;  %v854_v1 = vadd.f32 %v853_v63, %v852_v61 }
 0x146   :  { %v855_v2 = vmul.f32 0.125, %v854_v1  ;;  %v856_v3 = vmul.f32 %v847_v0, %v847_v0  ;;  %v860_v7 = vsub.f32 %v836_v48, %v847_v0 }
 0x148   :  { %v857_v4 = vsub.f32 %v855_v2, %v856_v3  ;;  %v867_v9 = vmul.f32 %v977_v8, %v860_v7 }
 0x14a   :  { %v858_v5 = vmax.f32 %v857_v4, 0.0 }
 0x14c   :  { %v868_v6 = vadd.f32 1e-05, %v858_v5 }
 0x14e   :  { %1180 = vrsqrt.f32 %v868_v6 }
 0x158   :  { %v1181_v10 = vpop.eup %1180 }
 0x159   :  { %v870_v12 = vmul.f32 %v1181_v10, %v867_v9 }
 0x15b   :  { %v878_v13 = vadd.f32 %v978_v11, %v870_v12 }
 0x15d   :  { %v879_v14 = vmin.f32 %v878_v13, 20.0 }
 0x15f   :  { %v880_v15 = vmul.f32 1.442695, %v879_v14 }
 0x161   :  { %1182 = vpow2.f32 %v880_v15 }
 0x16b   :  { %v1183_v16 = vpop.eup %1182 }
 0x16c   :  { %v882_v17 = vadd.f32 1.0, %v1183_v16 }
 0x16e   :  { %v883_v18 = vmul.f32 %v882_v17, %v882_v17 }
 0x170   :  { %v886_v19 = vadd.f32 1.0, %v883_v18  ;;  %v979_v20 = vadd.f32 -1.0, %v883_v18 }
 0x172   :  { %1184 = vrcp.f32 %v886_v19  ;;  %v885_v21 = vmul.f32 %v979_v20, %v878_v13 }
 0x17c   :  { %v1185_v22 = vpop.eup %1184 }
 0x17d   :  { %v888_v23 = vmul.f32 %v1185_v22, %v885_v21 }
 0x17f   :  { %v889_v24 = vpack.c.bf16 %v888_v23, %v888_v23 }
 0x181   :  { %890 = vst [vmem:[%s1466_s5] sm:$0xf] %v889_v24 }

</bundles_post_ra>
